<compile_context>
chip_gen: v5e
topology: v5e:2x2
jax: 0.10.0
libtpu: 0.0.40
codegen_flags: <defaults>
</compile_context>

<pallas_src>
import functools

import jax
import jax.numpy as jnp
from jax import lax
from jax.experimental import pallas as pl
from jax.experimental.pallas import tpu as pltpu


def _banded_weight_hw(w, *, K, H, W, C, Cout, p):
    """Fold the kh AND kw axes of a DHWIO conv weight into a banded matmul weight.

    w: (K, K, K, C, Cout) indexed (kd, kh, kw, ci, co).
    Returns WW of shape (K*H*W*C, H*W*Cout) with
      WW[(kd, xh, xw, ci), (h, w, co)] = w[kd, xh-h+p, xw-w+p, ci, co]
                                         if both offsets are in [0, K), else 0,
    so that with P[d, (kd, xh, xw, ci)] = x[d+kd-p, xh, xw, ci] (0 when D-OOB),
    P @ WW equals the "same"-padded 3D conv.
    """
    xh = jnp.arange(H)[:, None]
    hh = jnp.arange(H)[None, :]
    kh = xh - hh + p                               # (H, H)
    valid_h = (kh >= 0) & (kh < K)
    kh_safe = jnp.clip(kh, 0, K - 1)

    xw = jnp.arange(W)[:, None]
    ww_ = jnp.arange(W)[None, :]
    kw = xw - ww_ + p                              # (W, W)
    valid_w = (kw >= 0) & (kw < K)
    kw_safe = jnp.clip(kw, 0, K - 1)

    # (kd, xh, h, kw, ci, co) -> gather kh
    wg = w[:, kh_safe, :, :, :]                    # (K, H, H, K, C, Cout)
    # gather kw -> (kd, xh, h, xw, w, ci, co)
    wg = wg[:, :, :, kw_safe, :, :]                # (K, H, H, W, W, C, Cout)
    valid = (valid_h[None, :, :, None, None, None, None]
             & valid_w[None, None, None, :, :, None, None])
    wg = jnp.where(valid, wg, 0.0)
    # reorder to (kd, xh, xw, ci, h, w, co) and flatten
    wg = jnp.transpose(wg, (0, 1, 3, 5, 2, 4, 6))
    return wg.reshape(K * H * W * C, H * W * Cout)


def _resblock_kernel(x_ref, w1_ref, b1_ref, w2_ref, b2_ref, out_ref, vpad_ref,
                     *, K, p, D, HWC, activation):
    """One grid step = one batch element.

    x_ref      : (D, HWC)        channels-last input, (H,W,C) lane-flattened, f32
    w{1,2}_ref : (K*HWC, HWC)    banded weights, bf16
    b{1,2}_ref : (1, HWC)        lane-tiled biases, f32
    out_ref    : (D, HWC)
    vpad_ref   : (D+2p, HWC)     D-halo-padded conv-input scratch, f32
    """
    Dp = D + 2 * p

    # Zero only the D-halo rows (full-lane-width stores).  Re-done every step
    # (NOT pid==0-gated) so each TensorCore's private scratch is initialized.
    if p > 0:
        zrow = jnp.zeros((p, HWC), vpad_ref.dtype)
        vpad_ref[0:p, :] = zrow
        vpad_ref[p + D:Dp, :] = zrow

    def conv(v, w_ref, b_ref):
        """'Same'-padded 3D conv as ONE MXU matmul (bf16 operands, f32 acc)."""
        vpad_ref[p:p + D, :] = v                                   # overwrite interior
        patches = jnp.concatenate(
            [vpad_ref[kd:kd + D, :] for kd in range(K)], axis=1)   # (D, K*HWC), f32
        acc = jnp.dot(patches.astype(jnp.bfloat16), w_ref[...],
                      preferred_element_type=jnp.float32)          # (D, HWC), f32
        return acc + b_ref[...]

    h1 = jnp.maximum(conv(x_ref[...], w1_ref, b1_ref), 0.0)
    out = conv(h1, w2_ref, b2_ref)
    # Residual in full f32, read fresh right before the add (not held live
    # across both matmuls).
    out = out + x_ref[...]
    if activation:
        out = jnp.maximum(out, 0.0)
    out_ref[...] = out.astype(out_ref.dtype)


def non_equiv_res_block(x_nchw, params, *, kernel_size=3, activation=True):
    """upscale=False NonEquivResBlock forward. x_nchw: (N, C, D, H, W)."""
    w1, b1, w2, b2 = params
    N, C, D, H, W = x_nchw.shape
    K = kernel_size
    p = (K - 1) // 2
    Cout = w1.shape[-1]
    assert w1.shape == (K, K, K, C, Cout)
    assert Cout == C, "identity residual requires in_channels == out_channels"
    HWC = H * W * C

    # Single relayout copy: NCDHW -> (N, D, H*W*C).  No wrapper padding pass.
    x = jnp.transpose(x_nchw, (0, 2, 3, 4, 1)).reshape(N, D, HWC)

    # Banded weights (kh and kw folded in) and lane-tiled biases, built in XLA.
    ww1 = _banded_weight_hw(w1, K=K, H=H, W=W, C=C, Cout=Cout, p=p).astype(jnp.bfloat16)
    ww2 = _banded_weight_hw(w2, K=K, H=H, W=W, C=Cout, Cout=Cout, p=p).astype(jnp.bfloat16)
    b1f = jnp.tile(b1, H * W).reshape(1, H * W * Cout).astype(jnp.float32)
    b2f = jnp.tile(b2, H * W).reshape(1, H * W * Cout).astype(jnp.float32)

    kernel = functools.partial(
        _resblock_kernel, K=K, p=p, D=D, HWC=HWC, activation=activation)

    # VMEM accounting (double-buffered pipelined operands + scratch) + headroom.
    vmem_bytes = (
        2 * 2 * (K * HWC * HWC * 2)      # ww1, ww2 (bf16), double-buffered
        + 2 * 2 * (HWC * 4)              # biases (f32), double-buffered
        + 2 * (D * HWC * 4)              # x block, double-buffered
        + 2 * (D * HWC * 4)              # out block, double-buffered
        + (D + 2 * p) * HWC * 4          # vpad scratch
    )
    vmem_limit = int(vmem_bytes) + (8 << 20)

    out_flat = pl.pallas_call(
        kernel,
        out_shape=jax.ShapeDtypeStruct((N, D, HWC), x.dtype),
        grid_spec=pltpu.PrefetchScalarGridSpec(
            num_scalar_prefetch=0,
            grid=(N,),
            in_specs=[
                pl.BlockSpec((None, D, HWC), lambda n: (n, 0, 0)),
                pl.BlockSpec((K * HWC, HWC), lambda n: (0, 0)),
                pl.BlockSpec((1, HWC), lambda n: (0, 0)),
                pl.BlockSpec((K * HWC, HWC), lambda n: (0, 0)),
                pl.BlockSpec((1, HWC), lambda n: (0, 0)),
            ],
            out_specs=pl.BlockSpec((None, D, HWC), lambda n: (n, 0, 0)),
            scratch_shapes=[
                pltpu.VMEM((D + 2 * p, HWC), jnp.float32),   # D-halo-padded conv input
            ],
        ),
        compiler_params=pltpu.CompilerParams(
            dimension_semantics=("parallel",),
            vmem_limit_bytes=vmem_limit),
    )(x, ww1, b1f, ww2, b2f)

    out = out_flat.reshape(N, D, H, W, Cout)
    return jnp.transpose(out, (0, 4, 1, 2, 3))                    # back to NCDHW


def _ref_forward(x_nchw, params, *, kernel_size=3, activation=True):
    """Pure-JAX reference (lax.conv, f32) matching the PyTorch forward."""
    w1, b1, w2, b2 = params
    x = jnp.transpose(x_nchw, (0, 2, 3, 4, 1))
    dn = lax.conv_dimension_numbers(x.shape, w1.shape, ("NDHWC", "DHWIO", "NDHWC"))
    h = lax.conv_general_dilated(x, w1, (1, 1, 1), "SAME", dimension_numbers=dn) + b1
    h = jnp.maximum(h, 0.0)
    y = lax.conv_general_dilated(h, w2, (1, 1, 1), "SAME", dimension_numbers=dn) + b2
    y = y + x
    if activation:
        y = jnp.maximum(y, 0.0)
    return jnp.transpose(y, (0, 4, 1, 2, 3))


if __name__ == "__main__":
    # Small shapes: batch=2, channels=4 (in == out for the residual),
    # spatial D=H=W=8, kernel_size=3.
    N, C, D, H, W = 2, 4, 8, 8, 8
    K = 3

    key = jax.random.PRNGKey(0)
    kx, k1, k2, k3, k4 = jax.random.split(key, 5)

    x = jax.random.normal(kx, (N, C, D, H, W), dtype=jnp.float32)

    # Deterministic synthetic parameters (PyTorch Conv3d weight is OIDHW =
    # (C_out, C_in, kD, kH, kW); we build directly in DHWIO).
    scale = 0.1
    w1 = scale * jax.random.normal(k1, (K, K, K, C, C), dtype=jnp.float32)
    b1 = scale * jax.random.normal(k2, (C,), dtype=jnp.float32)
    w2 = scale * jax.random.normal(k3, (K, K, K, C, C), dtype=jnp.float32)
    b2 = scale * jax.random.normal(k4, (C,), dtype=jnp.float32)
    params = (w1, b1, w2, b2)

    out = non_equiv_res_block(x, params, kernel_size=K, activation=True)
    out = jax.block_until_ready(out)

    ref = jax.block_until_ready(
        _ref_forward(x, params, kernel_size=K, activation=True))
    assert out.shape == (N, C, D, H, W)
    # bf16 MXU operands (f32 accumulate / residual): loosened tolerance vs the
    # f32 lax.conv reference.
    assert jnp.allclose(out, ref, atol=5e-2, rtol=5e-2), "mismatch vs JAX reference"

    print("KERNEL_OK")
</pallas_src>

<mosaic_0001>
module attributes {stable_mosaic.version = 11 : i64} {
  func.func @_resblock_kernel(%arg0: i32, %arg1: memref<1x8x256xf32, #tpu.memory_space<vmem>>, %arg2: memref<768x256xbf16, #tpu.memory_space<vmem>>, %arg3: memref<1x256xf32, #tpu.memory_space<vmem>>, %arg4: memref<768x256xbf16, #tpu.memory_space<vmem>>, %arg5: memref<1x256xf32, #tpu.memory_space<vmem>>, %arg6: memref<1x8x256xf32, #tpu.memory_space<vmem>>, %arg7: memref<10x256xf32, #tpu.memory_space<vmem>>) attributes {dimension_semantics = [#tpu.dimension_semantics<parallel>], iteration_bounds = array<i64: 2>, scalar_prefetch = 0 : i64, scratch_operands = 1 : i64, tpu.core_type = #tpu.core_type<tc>, window_params = [{transform_indices = @transform_0, window_bounds = array<i64: 1, 8, 256>}, {pipeline_mode = #tpu.pipeline_mode<synchronous>, transform_indices = @transform_1, window_bounds = array<i64: 768, 256>}, {pipeline_mode = #tpu.pipeline_mode<synchronous>, transform_indices = @transform_2, window_bounds = array<i64: 1, 256>}, {pipeline_mode = #tpu.pipeline_mode<synchronous>, transform_indices = @transform_3, window_bounds = array<i64: 768, 256>}, {pipeline_mode = #tpu.pipeline_mode<synchronous>, transform_indices = @transform_4, window_bounds = array<i64: 1, 256>}, {transform_indices = @transform_5, window_bounds = array<i64: 1, 8, 256>}]} {
    %cst = arith.constant 0.000000e+00 : f32
    %0 = vector.broadcast %cst : f32 to vector<1x256xf32>
    %c0 = arith.constant 0 : index
    %c0_0 = arith.constant 0 : index
    %1 = vector.load %arg7[%c0, %c0_0] : memref<10x256xf32, #tpu.memory_space<vmem>>, vector<1x256xf32>
    tpu.vector_store %arg7[%c0, %c0_0], %0 {strides = array<i32>} : memref<10x256xf32, #tpu.memory_space<vmem>>, vector<1x256xf32>,
    %c9 = arith.constant 9 : index
    %c0_1 = arith.constant 0 : index
    %2 = vector.load %arg7[%c9, %c0_1] : memref<10x256xf32, #tpu.memory_space<vmem>>, vector<1x256xf32>
    tpu.vector_store %arg7[%c9, %c0_1], %0 {strides = array<i32>} : memref<10x256xf32, #tpu.memory_space<vmem>>, vector<1x256xf32>,
    %c0_2 = arith.constant 0 : index
    %c0_3 = arith.constant 0 : index
    %c0_4 = arith.constant 0 : index
    %3 = vector.load %arg1[%c0_2, %c0_3, %c0_4] : memref<1x8x256xf32, #tpu.memory_space<vmem>>, vector<1x8x256xf32>
    %4 = vector.shape_cast %3 : vector<1x8x256xf32> to vector<8x256xf32>
    %c1 = arith.constant 1 : index
    %c0_5 = arith.constant 0 : index
    %5 = vector.load %arg7[%c1, %c0_5] : memref<10x256xf32, #tpu.memory_space<vmem>>, vector<8x256xf32>
    tpu.vector_store %arg7[%c1, %c0_5], %4 {strides = array<i32>} : memref<10x256xf32, #tpu.memory_space<vmem>>, vector<8x256xf32>,
    %c0_6 = arith.constant 0 : index
    %c0_7 = arith.constant 0 : index
    %6 = vector.load %arg7[%c0_6, %c0_7] : memref<10x256xf32, #tpu.memory_space<vmem>>, vector<8x256xf32>
    %c1_8 = arith.constant 1 : index
    %c0_9 = arith.constant 0 : index
    %7 = vector.load %arg7[%c1_8, %c0_9] : memref<10x256xf32, #tpu.memory_space<vmem>>, vector<8x256xf32>
    %c2 = arith.constant 2 : index
    %c0_10 = arith.constant 0 : index
    %8 = vector.load %arg7[%c2, %c0_10] : memref<10x256xf32, #tpu.memory_space<vmem>>, vector<8x256xf32>
    %9 = tpu.concatenate %6, %7, %8 in 1 : vector<8x256xf32>, vector<8x256xf32>, vector<8x256xf32> -> vector<8x768xf32>
    %10 = arith.truncf %9 : vector<8x768xf32> to vector<8x768xbf16>
    %c0_11 = arith.constant 0 : index
    %c0_12 = arith.constant 0 : index
    %11 = vector.load %arg2[%c0_11, %c0_12] : memref<768x256xbf16, #tpu.memory_space<vmem>>, vector<768x256xbf16>
    %cst_13 = arith.constant dense<0.000000e+00> : vector<8x256xf32>
    %12 = tpu.matmul %10, %11, %cst_13 {dimension_numbers = #tpu.dot_dimension_numbers<[1], [0], [0], [1], [0, 0, 1, 1], [], []>} : vector<8x768xbf16>, vector<768x256xbf16>, vector<8x256xf32> -> vector<8x256xf32>
    %c0_14 = arith.constant 0 : index
    %c0_15 = arith.constant 0 : index
    %13 = vector.load %arg3[%c0_14, %c0_15] : memref<1x256xf32, #tpu.memory_space<vmem>>, vector<1x256xf32>
    %14 = vector.broadcast %13 : vector<1x256xf32> to vector<8x256xf32>
    %15 = arith.addf %12, %14 : vector<8x256xf32>
    %cst_16 = arith.constant 0.000000e+00 : f32
    %16 = vector.broadcast %cst_16 : f32 to vector<8x256xf32>
    %17 = arith.maximumf %15, %16 : vector<8x256xf32>
    %c1_17 = arith.constant 1 : index
    %c0_18 = arith.constant 0 : index
    %18 = vector.load %arg7[%c1_17, %c0_18] : memref<10x256xf32, #tpu.memory_space<vmem>>, vector<8x256xf32>
    tpu.vector_store %arg7[%c1_17, %c0_18], %17 {strides = array<i32>} : memref<10x256xf32, #tpu.memory_space<vmem>>, vector<8x256xf32>,
    %c0_19 = arith.constant 0 : index
    %c0_20 = arith.constant 0 : index
    %19 = vector.load %arg7[%c0_19, %c0_20] : memref<10x256xf32, #tpu.memory_space<vmem>>, vector<8x256xf32>
    %c1_21 = arith.constant 1 : index
    %c0_22 = arith.constant 0 : index
    %20 = vector.load %arg7[%c1_21, %c0_22] : memref<10x256xf32, #tpu.memory_space<vmem>>, vector<8x256xf32>
    %c2_23 = arith.constant 2 : index
    %c0_24 = arith.constant 0 : index
    %21 = vector.load %arg7[%c2_23, %c0_24] : memref<10x256xf32, #tpu.memory_space<vmem>>, vector<8x256xf32>
    %22 = tpu.concatenate %19, %20, %21 in 1 : vector<8x256xf32>, vector<8x256xf32>, vector<8x256xf32> -> vector<8x768xf32>
    %23 = arith.truncf %22 : vector<8x768xf32> to vector<8x768xbf16>
    %c0_25 = arith.constant 0 : index
    %c0_26 = arith.constant 0 : index
    %24 = vector.load %arg4[%c0_25, %c0_26] : memref<768x256xbf16, #tpu.memory_space<vmem>>, vector<768x256xbf16>
    %cst_27 = arith.constant dense<0.000000e+00> : vector<8x256xf32>
    %25 = tpu.matmul %23, %24, %cst_27 {dimension_numbers = #tpu.dot_dimension_numbers<[1], [0], [0], [1], [0, 0, 1, 1], [], []>} : vector<8x768xbf16>, vector<768x256xbf16>, vector<8x256xf32> -> vector<8x256xf32>
    %c0_28 = arith.constant 0 : index
    %c0_29 = arith.constant 0 : index
    %26 = vector.load %arg5[%c0_28, %c0_29] : memref<1x256xf32, #tpu.memory_space<vmem>>, vector<1x256xf32>
    %27 = vector.broadcast %26 : vector<1x256xf32> to vector<8x256xf32>
    %28 = arith.addf %25, %27 : vector<8x256xf32>
    %c0_30 = arith.constant 0 : index
    %c0_31 = arith.constant 0 : index
    %c0_32 = arith.constant 0 : index
    %29 = vector.load %arg1[%c0_30, %c0_31, %c0_32] : memref<1x8x256xf32, #tpu.memory_space<vmem>>, vector<1x8x256xf32>
    %30 = vector.shape_cast %29 : vector<1x8x256xf32> to vector<8x256xf32>
    %31 = arith.addf %28, %30 : vector<8x256xf32>
    %cst_33 = arith.constant 0.000000e+00 : f32
    %32 = vector.broadcast %cst_33 : f32 to vector<8x256xf32>
    %33 = arith.maximumf %31, %32 : vector<8x256xf32>
    %c0_34 = arith.constant 0 : index
    %c0_35 = arith.constant 0 : index
    %c0_36 = arith.constant 0 : index
    %34 = vector.load %arg6[%c0_34, %c0_35, %c0_36] : memref<1x8x256xf32, #tpu.memory_space<vmem>>, vector<1x8x256xf32>
    %35 = vector.shape_cast %34 : vector<1x8x256xf32> to vector<8x256xf32>
    %36 = vector.shape_cast %33 : vector<8x256xf32> to vector<1x8x256xf32>
    tpu.vector_store %arg6[%c0_34, %c0_35, %c0_36], %36 {strides = array<i32>} : memref<1x8x256xf32, #tpu.memory_space<vmem>>, vector<1x8x256xf32>,
    return
  }
  func.func @transform_0(%arg0: i32) -> (i32, i32, i32) {
    %c0_i32 = arith.constant 0 : i32
    %c0_i32_0 = arith.constant 0 : i32
    %c0_i32_1 = arith.constant 0 : i32
    return %arg0, %c0_i32, %c0_i32_0 : i32, i32, i32
  }
  func.func @transform_1(%arg0: i32) -> (i32, i32) {
    %c0_i32 = arith.constant 0 : i32
    %c0_i32_0 = arith.constant 0 : i32
    %c0_i32_1 = arith.constant 0 : i32
    return %c0_i32, %c0_i32_0 : i32, i32
  }
  func.func @transform_2(%arg0: i32) -> (i32, i32) {
    %c0_i32 = arith.constant 0 : i32
    %c0_i32_0 = arith.constant 0 : i32
    %c0_i32_1 = arith.constant 0 : i32
    return %c0_i32, %c0_i32_0 : i32, i32
  }
  func.func @transform_3(%arg0: i32) -> (i32, i32) {
    %c0_i32 = arith.constant 0 : i32
    %c0_i32_0 = arith.constant 0 : i32
    %c0_i32_1 = arith.constant 0 : i32
    return %c0_i32, %c0_i32_0 : i32, i32
  }
  func.func @transform_4(%arg0: i32) -> (i32, i32) {
    %c0_i32 = arith.constant 0 : i32
    %c0_i32_0 = arith.constant 0 : i32
    %c0_i32_1 = arith.constant 0 : i32
    return %c0_i32, %c0_i32_0 : i32, i32
  }
  func.func @transform_5(%arg0: i32) -> (i32, i32, i32) {
    %c0_i32 = arith.constant 0 : i32
    %c0_i32_0 = arith.constant 0 : i32
    %c0_i32_1 = arith.constant 0 : i32
    return %arg0, %c0_i32, %c0_i32_0 : i32, i32, i32
  }
}

</mosaic_0001>

<bundles_post_ra>
// kernel: tpu_custom_call.1
= control target key start
LH: loop header
LB: loop body
LE: loop exit
PB: predicated region body
PF: predicated region fallthrough
CT: control target
= control target key end

     0   :  { %10 = vsyncpa [#allocation4], 0  ;;  %s3519_s0 = inlined_call_operand.hbm [shape: f32[2,8,256], index: 0, kind: input, shape index: {}]   ;;  %s3520_s1 = inlined_call_operand.hbm [shape: bf16[768,256], index: 1, kind: input, shape index: {}]   ;;  %s3521_s2 = inlined_call_operand.hbm [shape: f32[1,256], index: 2, kind: input, shape index: {}]   ;;  %s3522_s3 = inlined_call_operand.hbm [shape: bf16[768,256], index: 3, kind: input, shape index: {}]   ;;  %s3523_s4 = inlined_call_operand.vmem [shape: f32[1,256], index: 4, kind: input, shape index: {}]   ;;  %s3524_s5 = inlined_call_operand.hbm [shape: f32[2,8,256], index: 5, kind: output, shape index: {}]  }
   0x1   :  { %12 = vsyncpa [#allocation4 + $0x1], 0 }
   0x2   :  { %13 = vsyncpa [#allocation7], 0 }
   0x3   :  { %14 = vsyncpa [#allocation10], 0 }
   0x4   :  { %15 = vsyncpa [#allocation5], 0 }
   0x5   :  { %17 = vsyncpa [#allocation5 + $0x1], 0  ;;  %s3300_s18 = smov 0   ;;  %s3302_s19 = smov 0  }
   0x6   :  { %s3304_s20 = smov 0   ;;  %s3306_s21 = smov 0  }
   0x7 LB: > { %s175_s24 = sshll.u32 %s3520_s1, 4  ;;  %s3324_s25 = sadd.s32 4294967295, %s3262_s21   ;;  %s3262_s21 = sphi %s3306_s21, %s3535_s21   ;;  %s3258_s20 = sphi %s3304_s20, %s3534_s20   ;;  %s3254_s19 = sphi %s3302_s19, %s3533_s19   ;;  %s3250_s18 = sphi %s3300_s18, %s3532_s18   ;;  %s176_s24 = int_to_ptr.hbm [resolvable:$true] %s175_s24 }
   0x8   : > { %p2007_p0 = scmp.ge.s32.totalorder %s3262_s21, 1  ;;  %p44_p1 = scmp.eq.s32.totalorder %s3324_s25, 0 }
   0x9   : > { %p164_p2 = scmp.lt.s32.totalorder %s3262_s21, 3  ;;  %s3264_s27 = smov [#allocation6]  }
   0xa   : > { %s177_s28 = sshll.u32 %s3264_s27, 4  ;;  %s190_s6 = sshll.u32 %s3521_s2, 4  ;;  %s178_s28 = int_to_ptr.vmem [resolvable:$true] %s177_s28  ;;  %s191_s6 = int_to_ptr.hbm [resolvable:$true] %s190_s6 }
   0xb   : > { %p3329_p3 = pnand %p2007_p0, %p164_p2  ;;  %s201_s10 = sshll.u32 %s3522_s3, 4  ;;  %s202_s10 = int_to_ptr.hbm [resolvable:$true] %s201_s10 }
   0xc   : > { %s3265_s11 = smov [#allocation8]   ;;  %s3266_s13 = smov 128  }
   0xd   : > { %p3004_p4 = pneg %p3329_p3  ;;  %s192_s12 = sshll.u32 %s3265_s11, 4  ;;  %s193_s12 = int_to_ptr.vmem [resolvable:$true] %s192_s12 }
   0xe   : > { %s3267_s14 = smov 8   ;;  %s3268_s15 = smov [#allocation9]  }
   0xf   : > { %p3341_p6 = pnand %p3004_p4, %p44_p1  ;;  %s203_s16 = sshll.u32 %s3268_s15, 4  ;;  %s204_s16 = int_to_ptr.vmem [resolvable:$true] %s203_s16 }
  0x10   : > { %s2006_s17 = sadd.s32 4294967294, %s3262_s21   ;;  %s3356_s22 = sadd.s32 1, %s3262_s21  }
  0x11   : > { %3007 = dma.hbm_to_vmem [thread:$0]  (!%p3341_p6), %s176_s24, 12288, %s178_s28, [#allocation7], %s3266_s13, %s3266_s13, %s3267_s14  }
  0x12   : > { %3010 = dma.hbm_to_vmem [thread:$0]  (!%p3341_p6), %s191_s6, 32, %s193_s12, [#allocation7]  }
  0x13   : > { %3013 = dma.hbm_to_vmem [thread:$0]  (!%p3341_p6), %s202_s10, 12288, %s204_s16, [#allocation10], %s3266_s13, %s3266_s13, %s3267_s14  }
  0x14   : > { %s30_s23 = sadd.s32 1, %s3258_s20  ;;  %s27_s24 = ssub.s32 %s3262_s21, %s3356_s22 }
  0x15   : > { %p37_p7 = scmp.ne.s32.totalorder %s3258_s20, %s3254_s19  ;;  %p28_p8 = scmp.eq.s32.totalorder %s27_s24, 0 }
  0x16   : > { %p38_p9 = scmp.eq.s32.totalorder %s3262_s21, 0  ;;  %p43_p10 = scmp.ne.s32.totalorder %s3254_s19, %s3250_s18 }
  0x17   : > { %p151_p11 = scmp.eq.s32.totalorder %s3324_s25, 1  ;;  %p157_p0 = scmp.eq.s32.totalorder %s2006_s17, 1 }
  0x18   : > { %s3368_s27 = scalar_select %p28_p8, %s3258_s20, %s30_s23  }
  0x19   : > { %p3372_p12 = por %p44_p1, %p43_p10  ;;  %p3376_p13 = por %p151_p11, %p37_p7 }
  0x1a   : > { %p39_p2 = por %p38_p9, %p37_p7  ;;  %s220_s30 = sand.u32 1, %s3258_s20  }
  0x1b   : > { %p3381_p4 = por %p157_p0, %p43_p10  ;;  %p3025_p6 = scmp.lt.s32.totalorder %s3262_s21, 2 }
  0x1c   : > { %s2012_s7 = sshll.u32 %s220_s30, 4  ;;  %s2794_s8 = sshll.u32 %s3262_s21, 4 }
  0x1d   : > { %s229_s11 = scalar_lea.hbm %s3519_s0, %s2794_s8  ;;  %s224_s13 = scalar_lea.vmem [#allocation3], %s2012_s7 }
  0x1e   : > { %s231_s12 = sshll.u32 %s229_s11, 4  ;;  %s233_s14 = sshll.u32 %s224_s13, 4  ;;  %s232_s12 = int_to_ptr.hbm [resolvable:$true] %s231_s12  ;;  %s234_s14 = int_to_ptr.vmem [resolvable:$true] %s233_s14 }
  0x1f   : > { %p3390_p8 = pnand %p3025_p6, %p39_p2  ;;  %s221_s16 = scalar_lea.sflag [#allocation4], %s220_s30 }
  0x20   : > { %s3158_s17 = sshra.s32 %s232_s12, 4  ;;  %s3165_s7 = scalar_lea.hbm %s3519_s0, 32  ;;  %s3159_s17 = int_to_ptr.hbm [resolvable:$true] %s3158_s17 }
  0x21   : > { %s3160_s23 = scalar_lea.hbm %s3159_s17, 16  ;;  %p3162_p9 = pneg %p3390_p8 }
  0x22   : > { %p3161_p7 = scmp.ne.s32.totalorder %s3159_s17, %s3160_s23  ;;  %p3166_p0 = scmp.lt.s32.totalorder %s3159_s17, %s3519_s0 }
  0x23   : > { %p3167_p2 = scmp.lt.s32.totalorder %s3165_s7, %s3160_s23 }
  0x24   : > { %p3163_p10 = pnand %p3162_p9, %p3161_p7 }
  0x25   : > { %p3168_p6 = por %p3167_p2, %p3166_p0 }
  0x26   : > { %p3164_p11 = pneg %p3163_p10 }
  0x28   : > { %p3169_p5 = pnand %p3168_p6, %p3164_p11 }
  0x2a   : > { %3172 = shalt.err (!%p3169_p5)
}
  0x2b   : > { %3017 = dma.hbm_to_vmem [thread:$0]  (!%p3390_p8), %s232_s12, 256, %s234_s14, %s221_s16  }
  0x2c   : > { %242 = sbr.rel (%p3329_p3) target bundleno = 482 (0x1e2), region = 40  ;;  %s3407_s30 = sand.u32 (!%p3329_p3), 1, %s3254_s19  }
  0x2d   : > { %s2016_s11 = sshll.u32 (!%p3329_p3), %s3407_s30, 4  ;;  %s245_s13 = scalar_lea.sflag (!%p3329_p3), [#allocation4], %s3407_s30 }
  0x2e   : > { %s3413_s17 = scalar_lea.vmem (!%p3329_p3), [#allocation3], %s2016_s11 }
  0x31   : > { %3233 = dma.done.wait (%p3372_p12), %s245_s13, 256  }
  0x32   : > { %3235 = vsyncadd (%p3372_p12), %s245_s13, 4294967040 }
  0x33   : > { %3237 = dma.done.wait (%p44_p1), [#allocation7], 12320  }
  0x34   : > { %3239 = vsyncadd (%p44_p1), [#allocation7], 4294954976 }
  0x35   : > { %3241 = dma.done.wait (%p44_p1), [#allocation10], 12288  }
  0x36   : > { %3243 = vsyncadd (%p44_p1), [#allocation10], 4294955008  ;;  %v2079_v0 = vld [vmem:[#allocation6 + $0x70] sm:$0xf]  ;;  %v2810_v1 = vld [vmem:[#allocation6 + $0x74] sm:$0xf0] }
  0x37   : > { %v2143_v2 = vld [vmem:[#allocation6 + $0xf0] sm:$0xf]  ;;  %v2080_v3 = vor.u32 %v2810_v1, %v2079_v0  ;;  %v2826_v4 = vld [vmem:[#allocation6 + $0xf4] sm:$0xf0]  ;;  %v2071_v11 = vld [vmem:[#allocation6 + $0x60] sm:$0xf] }
  0x38   : > { %v2207_v5 = vld [vmem:[#allocation6 + $0x170] sm:$0xf]  ;;  %v2842_v6 = vld [vmem:[#allocation6 + $0x174] sm:$0xf0]  ;;  %v2144_v7 = vor.u32 %v2826_v4, %v2143_v2  ;;  %v2808_v13 = vld [vmem:[#allocation6 + $0x64] sm:$0xf0] }
  0x39   : > { %v2208_v8 = vor.u32 %v2842_v6, %v2207_v5  ;;  %v2271_v9 = vld [vmem:[#allocation6 + $0x1f0] sm:$0xf]  ;;  %v2858_v10 = vld [vmem:[#allocation6 + $0x1f4] sm:$0xf0]  ;;  %936 = vmatpush.bf16.msra.mxu0 %v2080_v3  ;;  %v2135_v14 = vld [vmem:[#allocation6 + $0xe0] sm:$0xf]  ;;  %v2072_v16 = vor.u32 %v2808_v13, %v2071_v11 }
  0x3a   : > { %v2272_v12 = vor.u32 %v2858_v10, %v2271_v9  ;;  %v2824_v15 = vld [vmem:[#allocation6 + $0xe4] sm:$0xf0]  ;;  %949 = vmatpush.bf16.msra.mxu1 %v2144_v7  ;;  %v2199_v18 = vld [vmem:[#allocation6 + $0x160] sm:$0xf]  ;;  %v2063_v23 = vld [vmem:[#allocation6 + $0x50] sm:$0xf] }
  0x3b   : > { %962 = vmatpush.bf16.msra.mxu2 %v2208_v8  ;;  %v2136_v17 = vor.u32 %v2824_v15, %v2135_v14  ;;  %v2840_v19 = vld [vmem:[#allocation6 + $0x164] sm:$0xf0]  ;;  %v2263_v20 = vld [vmem:[#allocation6 + $0x1e0] sm:$0xf]  ;;  %v2806_v24 = vld [vmem:[#allocation6 + $0x54] sm:$0xf0] }
  0x3c   : > { %975 = vmatpush.bf16.msra.mxu3 %v2272_v12  ;;  %v2200_v21 = vor.u32 %v2840_v19, %v2199_v18  ;;  %v2856_v22 = vld [vmem:[#allocation6 + $0x1e4] sm:$0xf0]  ;;  %v2127_v26 = vld [vmem:[#allocation6 + $0xd0] sm:$0xf]  ;;  %v2822_v27 = vld [vmem:[#allocation6 + $0xd4] sm:$0xf0]  ;;  %v2064_v29 = vor.u32 %v2806_v24, %v2063_v23 }
  0x3d   : > { %v2264_v25 = vor.u32 %v2856_v22, %v2263_v20  ;;  %v2191_v28 = vld [vmem:[#allocation6 + $0x150] sm:$0xf]  ;;  %937 = vmatpush.bf16.msra.mxu0 %v2072_v16  ;;  %v2838_v30 = vld [vmem:[#allocation6 + $0x154] sm:$0xf0]  ;;  %v2128_v33 = vor.u32 %v2822_v27, %v2127_v26  ;;  %v2055_v35 = vld [vmem:[#allocation6 + $0x40] sm:$0xf] }
  0x3e   : > { %v2255_v31 = vld [vmem:[#allocation6 + $0x1d0] sm:$0xf]  ;;  %v2854_v32 = vld [vmem:[#allocation6 + $0x1d4] sm:$0xf0]  ;;  %950 = vmatpush.bf16.msra.mxu1 %v2136_v17  ;;  %v2192_v34 = vor.u32 %v2838_v30, %v2191_v28  ;;  %v2804_v36 = vld [vmem:[#allocation6 + $0x44] sm:$0xf0] }
  0x3f   : > { %963 = vmatpush.bf16.msra.mxu2 %v2200_v21  ;;  %v2119_v37 = vld [vmem:[#allocation6 + $0xc0] sm:$0xf]  ;;  %v2256_v38 = vor.u32 %v2854_v32, %v2255_v31  ;;  %v2820_v39 = vld [vmem:[#allocation6 + $0xc4] sm:$0xf0]  ;;  %v2056_v44 = vor.u32 %v2804_v36, %v2055_v35  ;;  %v2047_v47 = vld [vmem:[#allocation6 + $0x30] sm:$0xf] }
  0x40   : > { %976 = vmatpush.bf16.msra.mxu3 %v2264_v25  ;;  %v2183_v40 = vld [vmem:[#allocation6 + $0x140] sm:$0xf]  ;;  %v2836_v41 = vld [vmem:[#allocation6 + $0x144] sm:$0xf0]  ;;  %v2120_v45 = vor.u32 %v2820_v39, %v2119_v37  ;;  %v2802_v48 = vld [vmem:[#allocation6 + $0x34] sm:$0xf0]  ;;  %v291_v39 = vlaneseq }
  0x41   : > { %v2247_v42 = vld [vmem:[#allocation6 + $0x1c0] sm:$0xf]  ;;  %v2852_v43 = vld [vmem:[#allocation6 + $0x1c4] sm:$0xf0]  ;;  %938 = vmatpush.bf16.msra.mxu0 %v2064_v29  ;;  %v2184_v46 = vor.u32 %v2836_v41, %v2183_v40  ;;  %v2111_v49 = vld [vmem:[#allocation6 + $0xb0] sm:$0xf]  ;;  %v2048_v56 = vor.u32 %v2802_v48, %v2047_v47 }
  0x42   : > { %951 = vmatpush.bf16.msra.mxu1 %v2128_v33  ;;  %v2248_v50 = vor.u32 %v2852_v43, %v2247_v42  ;;  %v2818_v51 = vld [vmem:[#allocation6 + $0xb4] sm:$0xf0]  ;;  %v2175_v52 = vld [vmem:[#allocation6 + $0x130] sm:$0xf]  ;;  %v2039_v59 = vld [vmem:[#allocation6 + $0x20] sm:$0xf] }
  0x43   : > { %964 = vmatpush.bf16.msra.mxu2 %v2192_v34  ;;  %v2834_v53 = vld [vmem:[#allocation6 + $0x134] sm:$0xf0]  ;;  %v2239_v54 = vld [vmem:[#allocation6 + $0x1b0] sm:$0xf]  ;;  %v2112_v57 = vor.u32 %v2818_v51, %v2111_v49  ;;  %v2800_v60 = vld [vmem:[#allocation6 + $0x24] sm:$0xf0] }
  0x44   : > { %977 = vmatpush.bf16.msra.mxu3 %v2256_v38  ;;  %v2850_v55 = vld [vmem:[#allocation6 + $0x1b4] sm:$0xf0]  ;;  %v2176_v58 = vor.u32 %v2834_v53, %v2175_v52  ;;  %v2103_v61 = vld [vmem:[#allocation6 + $0xa0] sm:$0xf]  ;;  %v2816_v63 = vld [vmem:[#allocation6 + $0xa4] sm:$0xf0]  ;;  %v2040_v4 = vor.u32 %v2800_v60, %v2039_v59 }
  0x45   : > { %939 = vmatpush.bf16.msra.mxu0 %v2056_v44  ;;  %v2240_v62 = vor.u32 %v2850_v55, %v2239_v54  ;;  %v2167_v0 = vld [vmem:[#allocation6 + $0x120] sm:$0xf]  ;;  %v2832_v1 = vld [vmem:[#allocation6 + $0x124] sm:$0xf0]  ;;  %v2104_v5 = vor.u32 %v2816_v63, %v2103_v61  ;;  %v2031_v7 = vld [vmem:[#allocation6 + $0x10] sm:$0xf] }
  0x46   : > { %952 = vmatpush.bf16.msra.mxu1 %v2120_v45  ;;  %v2231_v2 = vld [vmem:[#allocation6 + $0x1a0] sm:$0xf]  ;;  %v2848_v3 = vld [vmem:[#allocation6 + $0x1a4] sm:$0xf0]  ;;  %v2168_v6 = vor.u32 %v2832_v1, %v2167_v0  ;;  %v2798_v8 = vld [vmem:[#allocation6 + $0x14] sm:$0xf0] }
  0x47   : > { %965 = vmatpush.bf16.msra.mxu2 %v2184_v46  ;;  %v2095_v9 = vld [vmem:[#allocation6 + $0x90] sm:$0xf]  ;;  %v2232_v10 = vor.u32 %v2848_v3, %v2231_v2  ;;  %v2814_v11 = vld [vmem:[#allocation6 + $0x94] sm:$0xf0]  ;;  %v2032_v16 = vor.u32 %v2798_v8, %v2031_v7  ;;  %v2023_v17 = vld [vmem:[#allocation6] sm:$0xf] }
  0x48   : > { %978 = vmatpush.bf16.msra.mxu3 %v2248_v50  ;;  %v2159_v12 = vld [vmem:[#allocation6 + $0x110] sm:$0xf]  ;;  %v2830_v13 = vld [vmem:[#allocation6 + $0x114] sm:$0xf0]  ;;  %v2796_v18 = vld [vmem:[#allocation6 + $0x4] sm:$0xf0]  ;;  %v2096_v19 = vor.u32 %v2814_v11, %v2095_v9 }
  0x49   : > { %940 = vmatpush.bf16.msra.mxu0 %v2048_v56  ;;  %v2223_v14 = vld [vmem:[#allocation6 + $0x190] sm:$0xf]  ;;  %v2846_v15 = vld [vmem:[#allocation6 + $0x194] sm:$0xf0]  ;;  %v2160_v20 = vor.u32 %v2830_v13, %v2159_v12  ;;  %v2087_v21 = vld [vmem:[#allocation6 + $0x80] sm:$0xf]  ;;  %v2024_v31 = vor.u32 %v2796_v18, %v2023_v17 }
  0x4a   : > { %953 = vmatpush.bf16.msra.mxu1 %v2112_v57  ;;  %v2812_v22 = vld [vmem:[#allocation6 + $0x84] sm:$0xf0]  ;;  %v2151_v23 = vld [vmem:[#allocation6 + $0x100] sm:$0xf]  ;;  %v2224_v24 = vor.u32 %v2846_v15, %v2223_v14  ;;  %v2335_v28 = vld [vmem:[#allocation6 + $0x270] sm:$0xf] }
  0x4b   : > { %966 = vmatpush.bf16.msra.mxu2 %v2176_v58  ;;  %v2828_v25 = vld [vmem:[#allocation6 + $0x104] sm:$0xf0]  ;;  %v2215_v26 = vld [vmem:[#allocation6 + $0x180] sm:$0xf]  ;;  %v2874_v29 = vld [vmem:[#allocation6 + $0x274] sm:$0xf0]  ;;  %v2088_v35 = vor.u32 %v2812_v22, %v2087_v21 }
  0x4c   : > { %979 = vmatpush.bf16.msra.mxu3 %v2240_v62  ;;  %v2844_v27 = vld [vmem:[#allocation6 + $0x184] sm:$0xf0]  ;;  %v2399_v30 = vld [vmem:[#allocation6 + $0x2f0] sm:$0xf]  ;;  %v2890_v32 = vld [vmem:[#allocation6 + $0x2f4] sm:$0xf0]  ;;  %v2152_v36 = vor.u32 %v2828_v25, %v2151_v23  ;;  %v2336_v41 = vor.u32 %v2874_v29, %v2335_v28 }
  0x4d   : > { %941 = vmatpush.bf16.msra.mxu0 %v2040_v4  ;;  %v2809_v33 = vld [vmem:[#allocation6 + $0x74] sm:$0xf]  ;;  %v2081_v34 = vld [vmem:[#allocation6 + $0x78] sm:$0xf0]  ;;  %v2216_v40 = vor.u32 %v2844_v27, %v2215_v26  ;;  %v2327_v42 = vld [vmem:[#allocation6 + $0x260] sm:$0xf]  ;;  %v2400_v44 = vor.u32 %v2890_v32, %v2399_v30 }
  0x4e   : > { %954 = vmatpush.bf16.msra.mxu1 %v2104_v5  ;;  %v2825_v37 = vld [vmem:[#allocation6 + $0xf4] sm:$0xf]  ;;  %v2145_v38 = vld [vmem:[#allocation6 + $0xf8] sm:$0xf0]  ;;  %v2872_v43 = vld [vmem:[#allocation6 + $0x264] sm:$0xf0]  ;;  %v2084_v45 = vor.u32 %v2809_v33, %v2081_v34 }
  0x4f   : > { %967 = vmatpush.bf16.msra.mxu2 %v2168_v6  ;;  %v2391_v46 = vld [vmem:[#allocation6 + $0x2e0] sm:$0xf]  ;;  %v2888_v47 = vld [vmem:[#allocation6 + $0x2e4] sm:$0xf0]  ;;  %v2807_v48 = vld [vmem:[#allocation6 + $0x64] sm:$0xf]  ;;  %v2148_v49 = vor.u32 %v2825_v37, %v2145_v38  ;;  %v2328_v57 = vor.u32 %v2872_v43, %v2327_v42 }
  0x50   : > { %980 = vmatpush.bf16.msra.mxu3 %v2232_v10  ;;  %v2073_v50 = vld [vmem:[#allocation6 + $0x68] sm:$0xf0]  ;;  %v2823_v51 = vld [vmem:[#allocation6 + $0xe4] sm:$0xf]  ;;  %v2319_v53 = vld [vmem:[#allocation6 + $0x250] sm:$0xf]  ;;  %v2392_v61 = vor.u32 %v2888_v47, %v2391_v46 }
  0x51   : > { %942 = vmatpush.bf16.msra.mxu0 %v2032_v16  ;;  %v2137_v52 = vld [vmem:[#allocation6 + $0xe8] sm:$0xf0]  ;;  %v2870_v54 = vld [vmem:[#allocation6 + $0x254] sm:$0xf0]  ;;  %vm293_vm0 = vcmp.lt.s32.totalorder %v291_v39, 256  ;;  %v300_v55 = vld [vmem:[%s3413_s17] sm:$0xff]  ;;  %v2076_v62 = vor.u32 %v2807_v48, %v2073_v50 }
  0x52   : > { %955 = vmatpush.bf16.msra.mxu1 %v2096_v19  ;;  %v301_v56 = vld [vmem:[%s3413_s17 + $0x8] sm:$0xff]  ;;  %v2383_v58 = vld [vmem:[#allocation6 + $0x2d0] sm:$0xf]  ;;  %v3269_v59 = vmov 0.0   ;;  %v304_v60 = vrot.slane %v300_v55, 7  ;;  %v2140_v1 = vor.u32 %v2823_v51, %v2137_v52  ;;  %v2320_v6 = vor.u32 %v2870_v54, %v2319_v53  ;;  %s290_s12 = scalar_lea.vmem [#allocation11], %s2016_s11 }
  0x53   : > { %968 = vmatpush.bf16.msra.mxu2 %v2160_v20  ;;  %295 = vst.msk [vmem:[#allocation2] ss:$8 sm:$0x3] %vm293_vm0, %v3269_v59  ;;  %v2886_v63 = vld [vmem:[#allocation6 + $0x2d4] sm:$0xf0]  ;;  %v305_v0 = vrot.slane %v301_v56, 7 }
  0x54   : > { %981 = vmatpush.bf16.msra.mxu3 %v2224_v24  ;;  %298 = vst.msk [vmem:[#allocation2 + $0x11] ss:$8 sm:$0x3] %vm293_vm0, %v3269_v59  ;;  %v2805_v2 = vld [vmem:[#allocation6 + $0x54] sm:$0xf]  ;;  %v2384_v9 = vor.u32 %v2886_v63, %v2383_v58  ;;  %vm326_vm1 = vcmask 1046528  }
  0x55   : > { %943 = vmatpush.bf16.msra.mxu0 %v2024_v31  ;;  %v2065_v3 = vld [vmem:[#allocation6 + $0x58] sm:$0xf0]  ;;  %308 = vst [vmem:[#allocation2] sm:$0xfe] %v304_v60  ;;  %v2821_v4 = vld [vmem:[#allocation6 + $0xd4] sm:$0xf] }
  0x56   : > { %956 = vmatpush.bf16.msra.mxu1 %v2088_v35  ;;  %v2129_v5 = vld [vmem:[#allocation6 + $0xd8] sm:$0xf0]  ;;  %310 = vst [vmem:[#allocation2 + $0x10] sm:$0x1] %v304_v60  ;;  %v2311_v7 = vld [vmem:[#allocation6 + $0x240] sm:$0xf]  ;;  %v2068_v10 = vor.u32 %v2805_v2, %v2065_v3 }
  0x57   : > { %969 = vmatpush.bf16.msra.mxu2 %v2152_v36  ;;  %v2868_v8 = vld [vmem:[#allocation6 + $0x244] sm:$0xf0]  ;;  %309 = vst [vmem:[#allocation2 + $0x8] sm:$0xfe] %v305_v0  ;;  %v2375_v11 = vld [vmem:[#allocation6 + $0x2c0] sm:$0xf]  ;;  %v2132_v13 = vor.u32 %v2821_v4, %v2129_v5 }
  0x58   : > { %982 = vmatpush.bf16.msra.mxu3 %v2216_v40  ;;  %v2884_v12 = vld [vmem:[#allocation6 + $0x2c4] sm:$0xf0]  ;;  %311 = vst [vmem:[#allocation2 + $0x18] sm:$0x1] %v305_v0  ;;  %v2803_v14 = vld [vmem:[#allocation6 + $0x44] sm:$0xf]  ;;  %v2312_v20 = vor.u32 %v2868_v8, %v2311_v7 }
  0x59   : > { %988 = vmatpush.bf16.msrb.mxu0 %v2336_v41  ;;  %v2057_v15 = vld [vmem:[#allocation6 + $0x48] sm:$0xf0]  ;;  %v2819_v16 = vld [vmem:[#allocation6 + $0xc4] sm:$0xf]  ;;  %v2303_v18 = vld [vmem:[#allocation6 + $0x230] sm:$0xf]  ;;  %v2376_v24 = vor.u32 %v2884_v12, %v2375_v11 }
  0x5a   : > { %1001 = vmatpush.bf16.msrb.mxu1 %v2400_v44  ;;  %v2121_v17 = vld [vmem:[#allocation6 + $0xc8] sm:$0xf0]  ;;  %v2866_v19 = vld [vmem:[#allocation6 + $0x234] sm:$0xf0]  ;;  %v2367_v21 = vld [vmem:[#allocation6 + $0x2b0] sm:$0xf]  ;;  %v2060_v25 = vor.u32 %v2803_v14, %v2057_v15 }
  0x5b   : > { %1014 = vmatpush.bf16.msrb.mxu2 %v2084_v45  ;;  %v2882_v22 = vld [vmem:[#allocation6 + $0x2b4] sm:$0xf0]  ;;  %v2801_v23 = vld [vmem:[#allocation6 + $0x34] sm:$0xf]  ;;  %v2049_v27 = vld [vmem:[#allocation6 + $0x38] sm:$0xf0]  ;;  %v2124_v29 = vor.u32 %v2819_v16, %v2121_v17  ;;  %v2304_v38 = vor.u32 %v2866_v19, %v2303_v18 }
  0x5c   : > { %1027 = vmatpush.bf16.msrb.mxu3 %v2148_v49  ;;  %v312_v26 = vld [vmem:[#allocation2] sm:$0xff]  ;;  %v2817_v31 = vld [vmem:[#allocation6 + $0xb4] sm:$0xf]  ;;  %v2113_v34 = vld [vmem:[#allocation6 + $0xb8] sm:$0xf0]  ;;  %v2368_v43 = vor.u32 %v2882_v22, %v2367_v21  ;;  %v2052_v44 = vor.u32 %v2801_v23, %v2049_v27  ;;  %vm339_vm2 = vcmask 1045504  }
  0x5d   : > { %989 = vmatpush.bf16.msrb.mxu0 %v2328_v57  ;;  %v314_v28 = vld [vmem:[#allocation2] sm:$0xfe]  ;;  %v3429_v30 = vpack.c.bf16 %v312_v26, %v312_v26  ;;  %v316_v32 = vld [vmem:[#allocation2 + $0x10] sm:$0x1]  ;;  %v2864_v46 = vld [vmem:[#allocation6 + $0x224] sm:$0xf0]  ;;  %v2116_v49 = vor.u32 %v2817_v31, %v2113_v34 }
  0x5e   : > { %1002 = vmatpush.bf16.msrb.mxu1 %v2392_v61  ;;  %v327_v33 = vrot.slane %v314_v28, 1  ;;  %v313_v35 = vld [vmem:[#allocation2 + $0x8] sm:$0xff]  ;;  %v328_v36 = vrot.slane %v316_v32, 1  ;;  %v2295_v40 = vld [vmem:[#allocation6 + $0x220] sm:$0xf]  ;;  %s2987_s14 = sshll.u32 %s3324_s25, 4 }
  0x5f   : > { %1015 = vmatpush.bf16.msrb.mxu2 %v2076_v62  ;;  %v315_v37 = vld [vmem:[#allocation2 + $0x8] sm:$0xfe]  ;;  %v3431_v39 = vpack.c.bf16 %v313_v35, %v313_v35  ;;  %v317_v41 = vld [vmem:[#allocation2 + $0x18] sm:$0x1]  ;;  %v2359_v47 = vld [vmem:[#allocation6 + $0x2a0] sm:$0xf]  ;;  %944 = vmatmul.bf16.vlgmr.msra.gmra.mxu0 %v3429_v30  ;;  %v2296_v57 = vor.u32 %v2864_v46, %v2295_v40  ;;  %s1902_s23 = scalar_lea.hbm %s3524_s5, %s2987_s14 }
  0x60   : > { %1028 = vmatpush.bf16.msrb.mxu3 %v2140_v1  ;;  %v330_v42 = vrot.slane %v315_v37, 1  ;;  %v329_v45 = vsel %vm326_vm1, %v327_v33, %v328_v36  ;;  %v331_v48 = vrot.slane %v317_v41, 1  ;;  %v2880_v51 = vld [vmem:[#allocation6 + $0x2a4] sm:$0xf0]  ;;  %v2799_v52 = vld [vmem:[#allocation6 + $0x24] sm:$0xf] }
  0x61   : > { %990 = vmatpush.bf16.msrb.mxu0 %v2320_v6  ;;  %v3435_v50 = vpack.c.bf16 %v329_v45, %v329_v45  ;;  %v2041_v53 = vld [vmem:[#allocation6 + $0x28] sm:$0xf0]  ;;  %957 = vmatmul.bf16.vlgmr.msra.gmra.mxu1 %v3431_v39  ;;  %v2815_v54 = vld [vmem:[#allocation6 + $0xa4] sm:$0xf]  ;;  %v2287_v59 = vld [vmem:[#allocation6 + $0x210] sm:$0xf]  ;;  %v2360_v61 = vor.u32 %v2880_v51, %v2359_v47 }
  0x62   : > { %1003 = vmatpush.bf16.msrb.mxu1 %v2384_v9  ;;  %v2105_v55 = vld [vmem:[#allocation6 + $0xa8] sm:$0xf0]  ;;  %v332_v56 = vsel %vm326_vm1, %v330_v42, %v331_v48  ;;  %v2862_v60 = vld [vmem:[#allocation6 + $0x214] sm:$0xf0]  ;;  %v2044_v62 = vor.u32 %v2799_v52, %v2041_v53  ;;  %v2351_v63 = vld [vmem:[#allocation6 + $0x290] sm:$0xf] }
  0x63   : > { %1016 = vmatpush.bf16.msrb.mxu2 %v2068_v10  ;;  %v3440_v58 = vpack.c.bf16 %v332_v56, %v332_v56  ;;  %v2878_v0 = vld [vmem:[#allocation6 + $0x294] sm:$0xf0]  ;;  %v2797_v1 = vld [vmem:[#allocation6 + $0x14] sm:$0xf]  ;;  %v2108_v2 = vor.u32 %v2815_v54, %v2105_v55  ;;  %v2033_v3 = vld [vmem:[#allocation6 + $0x18] sm:$0xf0]  ;;  %v2288_v11 = vor.u32 %v2862_v60, %v2287_v59 }
  0x64   : > { %1029 = vmatpush.bf16.msrb.mxu3 %v2132_v13  ;;  %970 = vmatmul.bf16.vlgmr.msra.gmra.mxu2 %v3435_v50  ;;  %v2813_v4 = vld [vmem:[#allocation6 + $0x94] sm:$0xf]  ;;  %v2097_v5 = vld [vmem:[#allocation6 + $0x98] sm:$0xf0]  ;;  %v2279_v6 = vld [vmem:[#allocation6 + $0x200] sm:$0xf]  ;;  %v2352_v15 = vor.u32 %v2878_v0, %v2351_v63  ;;  %v2036_v16 = vor.u32 %v2797_v1, %v2033_v3 }
  0x65   : > { %991 = vmatpush.bf16.msrb.mxu0 %v2312_v20  ;;  %983 = vmatmul.bf16.vlgmr.msra.gmra.mxu3 %v3440_v58  ;;  %v2860_v7 = vld [vmem:[#allocation6 + $0x204] sm:$0xf0]  ;;  %v318_v8 = vld [vmem:[#allocation2] sm:$0xfc]  ;;  %v320_v9 = vld [vmem:[#allocation2 + $0x10] sm:$0x3]  ;;  %v2100_v21 = vor.u32 %v2813_v4, %v2097_v5 }
  0x66   : > { %1004 = vmatpush.bf16.msrb.mxu1 %v2376_v24  ;;  %v319_v10 = vld [vmem:[#allocation2 + $0x8] sm:$0xfc]  ;;  %v2343_v12 = vld [vmem:[#allocation6 + $0x280] sm:$0xf]  ;;  %v321_v14 = vld [vmem:[#allocation2 + $0x18] sm:$0x3] }
  0x67   : > { %1017 = vmatpush.bf16.msrb.mxu2 %v2060_v25  ;;  %v2876_v13 = vld [vmem:[#allocation6 + $0x284] sm:$0xf0]  ;;  %v2795_v17 = vld [vmem:[#allocation6 + $0x4] sm:$0xf]  ;;  %v2025_v18 = vld [vmem:[#allocation6 + $0x8] sm:$0xf0] }
  0x68   : > { %1030 = vmatpush.bf16.msrb.mxu3 %v2124_v29  ;;  %v340_v19 = vrot.slane %v318_v8, 2  ;;  %v341_v20 = vrot.slane %v320_v9, 2  ;;  %v2811_v22 = vld [vmem:[#allocation6 + $0x84] sm:$0xf]  ;;  %v2089_v23 = vld [vmem:[#allocation6 + $0x88] sm:$0xf0]  ;;  %v2280_v29 = vor.u32 %v2860_v7, %v2279_v6  ;;  %v2344_v34 = vor.u32 %v2876_v13, %v2343_v12 }
  0x69   : > { %992 = vmatpush.bf16.msrb.mxu0 %v2304_v38  ;;  %v343_v24 = vrot.slane %v319_v10, 2  ;;  %v344_v25 = vrot.slane %v321_v14, 2  ;;  %v2841_v26 = vld [vmem:[#allocation6 + $0x174] sm:$0xf]  ;;  %v2209_v27 = vld [vmem:[#allocation6 + $0x178] sm:$0xf0]  ;;  %v2028_v35 = vor.u32 %v2795_v17, %v2025_v18  ;;  %v2092_v40 = vor.u32 %v2811_v22, %v2089_v23 }
  0x6a   : > { %1005 = vmatpush.bf16.msrb.mxu1 %v2368_v43  ;;  %v2857_v28 = vld [vmem:[#allocation6 + $0x1f4] sm:$0xf]  ;;  %v2273_v31 = vld [vmem:[#allocation6 + $0x1f8] sm:$0xf0]  ;;  %v342_v38 = vsel %vm339_vm2, %v340_v19, %v341_v20  ;;  %v2212_v41 = vor.u32 %v2841_v26, %v2209_v27  ;;  %v2839_v45 = vld [vmem:[#allocation6 + $0x164] sm:$0xf] }
  0x6b   : > { %1018 = vmatpush.bf16.msrb.mxu2 %v2052_v44  ;;  %v2873_v32 = vld [vmem:[#allocation6 + $0x274] sm:$0xf]  ;;  %v2337_v33 = vld [vmem:[#allocation6 + $0x278] sm:$0xf0]  ;;  %v345_v42 = vsel %vm339_vm2, %v343_v24, %v344_v25  ;;  %v2276_v43 = vor.u32 %v2857_v28, %v2273_v31  ;;  %v2201_v46 = vld [vmem:[#allocation6 + $0x168] sm:$0xf0] }
  0x6c   : > { %1031 = vmatpush.bf16.msrb.mxu3 %v2116_v49  ;;  %v2889_v36 = vld [vmem:[#allocation6 + $0x2f4] sm:$0xf]  ;;  %v2401_v37 = vld [vmem:[#allocation6 + $0x2f8] sm:$0xf0]  ;;  %v2340_v44 = vor.u32 %v2873_v32, %v2337_v33  ;;  %v2855_v47 = vld [vmem:[#allocation6 + $0x1e4] sm:$0xf]  ;;  %v3445_v49 = vpack.c.bf16 %v342_v38, %v342_v38  ;;  %v3447_v54 = vpack.c.bf16 %v345_v42, %v345_v42 }
  0x6d   : > { %993 = vmatpush.bf16.msrb.mxu0 %v2296_v57  ;;  %v2404_v48 = vor.u32 %v2889_v36, %v2401_v37  ;;  %v2265_v51 = vld [vmem:[#allocation6 + $0x1e8] sm:$0xf0]  ;;  %v2871_v52 = vld [vmem:[#allocation6 + $0x264] sm:$0xf]  ;;  %v2204_v57 = vor.u32 %v2839_v45, %v2201_v46  ;;  %v2853_v63 = vld [vmem:[#allocation6 + $0x1d4] sm:$0xf] }
  0x6e   : > { %1006 = vmatpush.bf16.msrb.mxu1 %v2360_v61  ;;  %v2329_v53 = vld [vmem:[#allocation6 + $0x268] sm:$0xf0]  ;;  %v2887_v55 = vld [vmem:[#allocation6 + $0x2e4] sm:$0xf]  ;;  %v2268_v59 = vor.u32 %v2855_v47, %v2265_v51  ;;  %v2837_v61 = vld [vmem:[#allocation6 + $0x154] sm:$0xf] }
  0x6f   : > { %1019 = vmatpush.bf16.msrb.mxu2 %v2044_v62  ;;  %v2393_v56 = vld [vmem:[#allocation6 + $0x2e8] sm:$0xf0]  ;;  %v2332_v60 = vor.u32 %v2871_v52, %v2329_v53  ;;  %v2193_v62 = vld [vmem:[#allocation6 + $0x158] sm:$0xf0]  ;;  %v2885_v4 = vld [vmem:[#allocation6 + $0x2d4] sm:$0xf] }
  0x70   : > { %1032 = vmatpush.bf16.msrb.mxu3 %v2108_v2  ;;  %v2396_v0 = vor.u32 %v2887_v55, %v2393_v56  ;;  %v2257_v1 = vld [vmem:[#allocation6 + $0x1d8] sm:$0xf0]  ;;  %v2869_v2 = vld [vmem:[#allocation6 + $0x254] sm:$0xf]  ;;  %v2196_v6 = vor.u32 %v2837_v61, %v2193_v62  ;;  %v2835_v9 = vld [vmem:[#allocation6 + $0x144] sm:$0xf] }
  0x71   : > { %994 = vmatpush.bf16.msrb.mxu0 %v2288_v11  ;;  %v2321_v3 = vld [vmem:[#allocation6 + $0x258] sm:$0xf0]  ;;  %v2260_v7 = vor.u32 %v2853_v63, %v2257_v1  ;;  %v2185_v10 = vld [vmem:[#allocation6 + $0x148] sm:$0xf0]  ;;  %v2851_v11 = vld [vmem:[#allocation6 + $0x1c4] sm:$0xf] }
  0x72   : > { %1007 = vmatpush.bf16.msrb.mxu1 %v2352_v15  ;;  %v2385_v5 = vld [vmem:[#allocation6 + $0x2d8] sm:$0xf0]  ;;  %v2324_v8 = vor.u32 %v2869_v2, %v2321_v3  ;;  %v2249_v13 = vld [vmem:[#allocation6 + $0x1c8] sm:$0xf0]  ;;  %v2867_v14 = vld [vmem:[#allocation6 + $0x244] sm:$0xf]  ;;  %v2188_v17 = vor.u32 %v2835_v9, %v2185_v10 }
  0x73   : > { %1020 = vmatpush.bf16.msrb.mxu2 %v2036_v16  ;;  %v2388_v12 = vor.u32 %v2885_v4, %v2385_v5  ;;  %v2313_v15 = vld [vmem:[#allocation6 + $0x248] sm:$0xf0]  ;;  %v2883_v16 = vld [vmem:[#allocation6 + $0x2c4] sm:$0xf]  ;;  %v2252_v18 = vor.u32 %v2851_v11, %v2249_v13  ;;  %v2833_v20 = vld [vmem:[#allocation6 + $0x134] sm:$0xf] }
  0x74   : > { %1033 = vmatpush.bf16.msrb.mxu3 %v2100_v21  ;;  %v2316_v19 = vor.u32 %v2867_v14, %v2313_v15  ;;  %v2177_v21 = vld [vmem:[#allocation6 + $0x138] sm:$0xf0]  ;;  %v2849_v22 = vld [vmem:[#allocation6 + $0x1b4] sm:$0xf]  ;;  %v2831_v32 = vld [vmem:[#allocation6 + $0x124] sm:$0xf] }
  0x75   : > { %995 = vmatpush.bf16.msrb.mxu0 %v2280_v29  ;;  %v2241_v24 = vld [vmem:[#allocation6 + $0x1b8] sm:$0xf0]  ;;  %v2865_v25 = vld [vmem:[#allocation6 + $0x234] sm:$0xf]  ;;  %v2169_v33 = vld [vmem:[#allocation6 + $0x128] sm:$0xf0] }
  0x76   : > { %1008 = vmatpush.bf16.msrb.mxu1 %v2344_v34  ;;  %v2305_v26 = vld [vmem:[#allocation6 + $0x238] sm:$0xf0]  ;;  %v2881_v27 = vld [vmem:[#allocation6 + $0x2b4] sm:$0xf]  ;;  %v2244_v29 = vor.u32 %v2849_v22, %v2241_v24  ;;  %v2847_v34 = vld [vmem:[#allocation6 + $0x1a4] sm:$0xf]  ;;  %v2172_v42 = vor.u32 %v2831_v32, %v2169_v33 }
  0x77   : > { %1021 = vmatpush.bf16.msrb.mxu2 %v2028_v35  ;;  %v2369_v28 = vld [vmem:[#allocation6 + $0x2b8] sm:$0xf0]  ;;  %v2308_v31 = vor.u32 %v2865_v25, %v2305_v26  ;;  %v2233_v36 = vld [vmem:[#allocation6 + $0x1a8] sm:$0xf0]  ;;  %v2863_v37 = vld [vmem:[#allocation6 + $0x224] sm:$0xf] }
  0x78   : > { %1034 = vmatpush.bf16.msrb.mxu3 %v2092_v40  ;;  %996 = vmatmul.bf16.vlgmr.msrb.gmra.mxu0 %v3445_v49  ;;  %v2372_v35 = vor.u32 %v2881_v27, %v2369_v28  ;;  %v2297_v38 = vld [vmem:[#allocation6 + $0x228] sm:$0xf0]  ;;  %v2879_v40 = vld [vmem:[#allocation6 + $0x2a4] sm:$0xf]  ;;  %v2829_v45 = vld [vmem:[#allocation6 + $0x114] sm:$0xf] }
  0x79   : > { %1040 = vmatpush.bf16.msra.mxu0 %v2212_v41  ;;  %1009 = vmatmul.bf16.vlgmr.msrb.gmra.mxu1 %v3447_v54  ;;  %v2361_v41 = vld [vmem:[#allocation6 + $0x2a8] sm:$0xf0]  ;;  %v2161_v46 = vld [vmem:[#allocation6 + $0x118] sm:$0xf0]  ;;  %v2845_v47 = vld [vmem:[#allocation6 + $0x194] sm:$0xf] }
  0x7a   : > { %1053 = vmatpush.bf16.msra.mxu1 %v2276_v43  ;;  %1022 = vmatmul.bf16.vlgmr.msrb.gmra.mxu2 %v3429_v30  ;;  %v2377_v30 = vld [vmem:[#allocation6 + $0x2c8] sm:$0xf0]  ;;  %v2236_v43 = vor.u32 %v2847_v34, %v2233_v36  ;;  %v2225_v51 = vld [vmem:[#allocation6 + $0x198] sm:$0xf0]  ;;  %v2861_v52 = vld [vmem:[#allocation6 + $0x214] sm:$0xf] }
  0x7b   : > { %1066 = vmatpush.bf16.msra.mxu2 %v2340_v44  ;;  %1035 = vmatmul.bf16.vlgmr.msrb.gmra.mxu3 %v3431_v39  ;;  %v2380_v23 = vor.u32 %v2883_v16, %v2377_v30  ;;  %v2180_v39 = vor.u32 %v2833_v20, %v2177_v21  ;;  %v2300_v44 = vor.u32 %v2863_v37, %v2297_v38  ;;  %v2289_v53 = vld [vmem:[#allocation6 + $0x218] sm:$0xf0]  ;;  %v2877_v55 = vld [vmem:[#allocation6 + $0x294] sm:$0xf]  ;;  %v2153_v62 = vld [vmem:[#allocation6 + $0x108] sm:$0xf0] }
  0x7c   : > { %1079 = vmatpush.bf16.msra.mxu3 %v2404_v48  ;;  %v2364_v48 = vor.u32 %v2879_v40, %v2361_v41  ;;  %v2353_v56 = vld [vmem:[#allocation6 + $0x298] sm:$0xf0]  ;;  %v2292_v61 = vor.u32 %v2861_v52, %v2289_v53  ;;  %v2843_v63 = vld [vmem:[#allocation6 + $0x184] sm:$0xf]  ;;  %v2281_v3 = vld [vmem:[#allocation6 + $0x208] sm:$0xf0] }
  0x7d   : > { %1041 = vmatpush.bf16.msra.mxu0 %v2204_v57  ;;  %v2164_v57 = vor.u32 %v2829_v45, %v2161_v46  ;;  %v2356_v1 = vor.u32 %v2877_v55, %v2353_v56  ;;  %v2859_v2 = vld [vmem:[#allocation6 + $0x204] sm:$0xf]  ;;  %v2345_v5 = vld [vmem:[#allocation6 + $0x288] sm:$0xf0]  ;;  %v2591_v9 = vld [vmem:[#allocation9 + $0x170] sm:$0xf] }
  0x7e   : > { %1054 = vmatpush.bf16.msra.mxu1 %v2268_v59  ;;  %v2827_v59 = vld [vmem:[#allocation6 + $0x104] sm:$0xf]  ;;  %v2938_v10 = vld [vmem:[#allocation9 + $0x174] sm:$0xf0]  ;;  %v2904_v30 = vld [vmem:[#allocation9 + $0x64] sm:$0xf0] }
  0x7f   : > { %1067 = vmatpush.bf16.msra.mxu2 %v2332_v60  ;;  %v2228_v60 = vor.u32 %v2845_v47, %v2225_v51  ;;  %v2875_v4 = vld [vmem:[#allocation6 + $0x284] sm:$0xf]  ;;  %v2592_v15 = vor.u32 %v2938_v10, %v2591_v9  ;;  %v2447_v21 = vld [vmem:[#allocation9 + $0x50] sm:$0xf]  ;;  %v2902_v22 = vld [vmem:[#allocation9 + $0x54] sm:$0xf0] }
  0x80   : > { %1080 = vmatpush.bf16.msra.mxu3 %v2396_v0  ;;  %v2217_v0 = vld [vmem:[#allocation6 + $0x188] sm:$0xf0]  ;;  %v2348_v13 = vor.u32 %v2875_v4, %v2345_v5  ;;  %v2455_v16 = vld [vmem:[#allocation9 + $0x60] sm:$0xf]  ;;  %v2934_v24 = vld [vmem:[#allocation9 + $0x154] sm:$0xf0]  ;;  %v2448_v25 = vor.u32 %v2902_v22, %v2447_v21 }
  0x81   : > { %1042 = vmatpush.bf16.msra.mxu0 %v2196_v6  ;;  %v2463_v6 = vld [vmem:[#allocation9 + $0x70] sm:$0xf]  ;;  %v2220_v11 = vor.u32 %v2843_v63, %v2217_v0  ;;  %v2439_v27 = vld [vmem:[#allocation9 + $0x40] sm:$0xf]  ;;  %v2900_v28 = vld [vmem:[#allocation9 + $0x44] sm:$0xf0] }
  0x82   : > { %1055 = vmatpush.bf16.msra.mxu1 %v2260_v7  ;;  %v2906_v7 = vld [vmem:[#allocation9 + $0x74] sm:$0xf0]  ;;  %v2431_v32 = vld [vmem:[#allocation9 + $0x30] sm:$0xf]  ;;  %v2896_v36 = vld [vmem:[#allocation9 + $0x24] sm:$0xf0] }
  0x83   : > { %1068 = vmatpush.bf16.msra.mxu2 %v2324_v8  ;;  %v2156_v8 = vor.u32 %v2827_v59, %v2153_v62  ;;  %v2464_v14 = vor.u32 %v2906_v7, %v2463_v6  ;;  %v2559_v33 = vld [vmem:[#allocation9 + $0x130] sm:$0xf]  ;;  %v2551_v38 = vld [vmem:[#allocation9 + $0x120] sm:$0xf]  ;;  %v2928_v40 = vld [vmem:[#allocation9 + $0x124] sm:$0xf0] }
  0x84   : > { %1081 = vmatpush.bf16.msra.mxu3 %v2388_v12  ;;  %v2284_v12 = vor.u32 %v2859_v2, %v2281_v3  ;;  %v2552_v41 = vor.u32 %v2928_v40, %v2551_v38  ;;  %v2926_v46 = vld [vmem:[#allocation9 + $0x114] sm:$0xf0]  ;;  %v2407_v47 = vld [vmem:[#allocation9] sm:$0xf]  ;;  %v2719_v52 = vld [vmem:[#allocation9 + $0x270] sm:$0xf] }
  0x85   : > { %1043 = vmatpush.bf16.msra.mxu0 %v2188_v17  ;;  %v2583_v17 = vld [vmem:[#allocation9 + $0x160] sm:$0xf]  ;;  %v2970_v53 = vld [vmem:[#allocation9 + $0x274] sm:$0xf0]  ;;  %v2924_v59 = vld [vmem:[#allocation9 + $0x104] sm:$0xf0] }
  0x86   : > { %1056 = vmatpush.bf16.msra.mxu1 %v2252_v18  ;;  %v2936_v18 = vld [vmem:[#allocation9 + $0x164] sm:$0xf0]  ;;  %v2720_v56 = vor.u32 %v2970_v53, %v2719_v52  ;;  %v2465_v62 = vld [vmem:[#allocation9 + $0x78] sm:$0xf0]  ;;  %v2711_v63 = vld [vmem:[#allocation9 + $0x260] sm:$0xf] }
  0x87   : > { %1069 = vmatpush.bf16.msra.mxu2 %v2316_v19  ;;  %v2456_v19 = vor.u32 %v2904_v30, %v2455_v16  ;;  %v2584_v20 = vor.u32 %v2936_v18, %v2583_v17  ;;  %v2527_v3 = vld [vmem:[#allocation9 + $0xf0] sm:$0xf]  ;;  %v2922_v4 = vld [vmem:[#allocation9 + $0xf4] sm:$0xf0]  ;;  %v2903_v5 = vld [vmem:[#allocation9 + $0x64] sm:$0xf] }
  0x88   : > { %1082 = vmatpush.bf16.msra.mxu3 %v2380_v23  ;;  %v2575_v23 = vld [vmem:[#allocation9 + $0x150] sm:$0xf]  ;;  %v2528_v6 = vor.u32 %v2922_v4, %v2527_v3  ;;  %v2457_v7 = vld [vmem:[#allocation9 + $0x68] sm:$0xf0]  ;;  %v2966_v9 = vld [vmem:[#allocation9 + $0x254] sm:$0xf0] }
  0x89   : > { %1044 = vmatpush.bf16.msra.mxu0 %v2180_v39  ;;  %v2576_v26 = vor.u32 %v2934_v24, %v2575_v23  ;;  %v2567_v39 = vld [vmem:[#allocation9 + $0x140] sm:$0xf]  ;;  %v2460_v10 = vor.u32 %v2903_v5, %v2457_v7  ;;  %v2920_v16 = vld [vmem:[#allocation9 + $0xe4] sm:$0xf0]  ;;  %v2901_v17 = vld [vmem:[#allocation9 + $0x54] sm:$0xf] }
  0x8a   : > { %1057 = vmatpush.bf16.msra.mxu1 %v2244_v29  ;;  %v2440_v29 = vor.u32 %v2900_v28, %v2439_v27  ;;  %v2449_v18 = vld [vmem:[#allocation9 + $0x58] sm:$0xf0]  ;;  %v2964_v21 = vld [vmem:[#allocation9 + $0x244] sm:$0xf0]  ;;  %v2647_v23 = vld [vmem:[#allocation9 + $0x1e0] sm:$0xf] }
  0x8b   : > { %1070 = vmatpush.bf16.msra.mxu2 %v2308_v31  ;;  %v2952_v24 = vld [vmem:[#allocation9 + $0x1e4] sm:$0xf0]  ;;  %v2918_v27 = vld [vmem:[#allocation9 + $0xd4] sm:$0xf0]  ;;  %v2897_v38 = vld [vmem:[#allocation9 + $0x34] sm:$0xf] }
  0x8c   : > { %1083 = vmatpush.bf16.msra.mxu3 %v2372_v35  ;;  %v2423_v35 = vld [vmem:[#allocation9 + $0x20] sm:$0xf]  ;;  %v2433_v40 = vld [vmem:[#allocation9 + $0x38] sm:$0xf0]  ;;  %v2914_v52 = vld [vmem:[#allocation9 + $0xb4] sm:$0xf0] }
  0x8d   : > { %1045 = vmatpush.bf16.msra.mxu0 %v2172_v42  ;;  %v2424_v37 = vor.u32 %v2896_v36, %v2423_v35  ;;  %v2415_v42 = vld [vmem:[#allocation9 + $0x10] sm:$0xf]  ;;  %v2503_v35 = vld [vmem:[#allocation9 + $0xc0] sm:$0xf]  ;;  %v2916_v36 = vld [vmem:[#allocation9 + $0xc4] sm:$0xf0] }
  0x8e   : > { %1058 = vmatpush.bf16.msra.mxu1 %v2236_v43  ;;  %v2894_v43 = vld [vmem:[#allocation9 + $0x14] sm:$0xf0]  ;;  %v2895_v53 = vld [vmem:[#allocation9 + $0x24] sm:$0xf]  ;;  %v2912_v4 = vld [vmem:[#allocation9 + $0xa4] sm:$0xf0] }
  0x8f   : > { %1071 = vmatpush.bf16.msra.mxu2 %v2300_v44  ;;  %v2543_v44 = vld [vmem:[#allocation9 + $0x110] sm:$0xf]  ;;  %v2416_v45 = vor.u32 %v2894_v43, %v2415_v42  ;;  %v2679_v42 = vld [vmem:[#allocation9 + $0x220] sm:$0xf]  ;;  %v2960_v43 = vld [vmem:[#allocation9 + $0x224] sm:$0xf0] }
  0x90   : > { %1084 = vmatpush.bf16.msra.mxu3 %v2364_v48  ;;  %v2892_v48 = vld [vmem:[#allocation9 + $0x4] sm:$0xf0]  ;;  %v2544_v51 = vor.u32 %v2926_v46, %v2543_v44  ;;  %v2631_v46 = vld [vmem:[#allocation9 + $0x1c0] sm:$0xf]  ;;  %v2893_v5 = vld [vmem:[#allocation9 + $0x14] sm:$0xf] }
  0x91   : > { %1046 = vmatpush.bf16.msra.mxu0 %v2164_v57  ;;  %v2408_v55 = vor.u32 %v2892_v48, %v2407_v47  ;;  %v2535_v57 = vld [vmem:[#allocation9 + $0x100] sm:$0xf]  ;;  %v2948_v47 = vld [vmem:[#allocation9 + $0x1c4] sm:$0xf0]  ;;  %s1904_s24 = sshll.u32 %s290_s12, 4  ;;  %s1906_s8 = sshll.u32 %s1902_s23, 4  ;;  %s1905_s24 = int_to_ptr.vmem [resolvable:$true] %s1904_s24  ;;  %s1907_s8 = int_to_ptr.hbm [resolvable:$true] %s1906_s8 }
  0x92   : > { %1059 = vmatpush.bf16.msra.mxu1 %v2228_v60  ;;  %v2536_v60 = vor.u32 %v2924_v59, %v2535_v57  ;;  %v2632_v48 = vor.u32 %v2948_v47, %v2631_v46  ;;  %v2671_v57 = vld [vmem:[#allocation9 + $0x210] sm:$0xf]  ;;  %v2958_v59 = vld [vmem:[#allocation9 + $0x214] sm:$0xf0]  ;;  %v2919_v46 = vld [vmem:[#allocation9 + $0xe4] sm:$0xf] }
  0x93   : > { %1072 = vmatpush.bf16.msra.mxu2 %v2292_v61  ;;  %v2905_v61 = vld [vmem:[#allocation9 + $0x74] sm:$0xf]  ;;  %v2521_v47 = vld [vmem:[#allocation9 + $0xe8] sm:$0xf0]  ;;  %s1891_s7 = scalar_lea.sflag [#allocation5], %s3407_s30  ;;  %s3202_s25 = sshra.s32 %s1907_s8, 4  ;;  %s3203_s25 = int_to_ptr.hbm [resolvable:$true] %s3202_s25 }
  0x94   : > { %1085 = vmatpush.bf16.msra.mxu3 %v2356_v1  ;;  %v2468_v0 = vor.u32 %v2905_v61, %v2465_v62  ;;  %v2968_v1 = vld [vmem:[#allocation9 + $0x264] sm:$0xf0]  ;;  %v2672_v62 = vor.u32 %v2958_v59, %v2671_v57  ;;  %s3204_s9 = scalar_lea.hbm %s3203_s25, 16  ;;  %s3208_s13 = scalar_lea.hbm %s3524_s5, 32 }
  0x95   : > { %1047 = vmatpush.bf16.msra.mxu0 %v2156_v8  ;;  %v2712_v2 = vor.u32 %v2968_v1, %v2711_v63  ;;  %v2703_v8 = vld [vmem:[#allocation9 + $0x250] sm:$0xf]  ;;  %v2487_v1 = vld [vmem:[#allocation9 + $0xa0] sm:$0xf]  ;;  %p3205_p1 = scmp.ne.s32.totalorder %s3203_s25, %s3204_s9  ;;  %p3209_p12 = scmp.lt.s32.totalorder %s3203_s25, %s3524_s5 }
  0x96   : > { %1060 = vmatpush.bf16.msra.mxu1 %v2220_v11  ;;  %v2704_v11 = vor.u32 %v2966_v9, %v2703_v8  ;;  %v2623_v63 = vld [vmem:[#allocation9 + $0x1b0] sm:$0xf]  ;;  %v2488_v7 = vor.u32 %v2912_v4, %v2487_v1  ;;  %v2980_v1 = vld [vmem:[#allocation9 + $0x2c4] sm:$0xf0]  ;;  %p3210_p8 = scmp.lt.s32.totalorder %s3208_s13, %s3204_s9 }
  0x97   : > { %1073 = vmatpush.bf16.msra.mxu2 %v2284_v12  ;;  %v2655_v12 = vld [vmem:[#allocation9 + $0x1f0] sm:$0xf]  ;;  %p3206_p3 = pnand %p3205_p1, %p3376_p13 }
  0x98   : > { %1086 = vmatpush.bf16.msra.mxu3 %v2348_v13  ;;  %1048 = vmatmul.bf16.vlgmr.msra.gmra.mxu0 %v3435_v50  ;;  %v2932_v50 = vld [vmem:[#allocation9 + $0x144] sm:$0xf0]  ;;  %v2954_v13 = vld [vmem:[#allocation9 + $0x1f4] sm:$0xf0]  ;;  %p3211_p7 = por %p3210_p8, %p3209_p12 }
  0x99   : > { %1726 = vmatpush.bf16.msrb.mxu0 %v2464_v14  ;;  %1061 = vmatmul.bf16.vlgmr.msra.gmra.mxu1 %v3440_v58  ;;  %v2568_v31 = vor.u32 %v2932_v50, %v2567_v39  ;;  %v2898_v58 = vld [vmem:[#allocation9 + $0x34] sm:$0xf0]  ;;  %v2656_v14 = vor.u32 %v2954_v13, %v2655_v12  ;;  %v2899_v39 = vld [vmem:[#allocation9 + $0x44] sm:$0xf]  ;;  %v2441_v50 = vld [vmem:[#allocation9 + $0x48] sm:$0xf0]  ;;  %p3207_p5 = pneg %p3206_p3 }
  0x9a   : > { %1074 = vmatmul.bf16.vlgmr.msra.gmra.mxu2 %v3445_v49  ;;  %v2930_v49 = vld [vmem:[#allocation9 + $0x134] sm:$0xf0]  ;;  %v2432_v34 = vor.u32 %v2898_v58, %v2431_v32  ;;  %1739 = vmatpush.bf16.msrb.mxu1 %v2528_v6  ;;  %v2417_v6 = vld [vmem:[#allocation9 + $0x18] sm:$0xf0]  ;;  %v2615_v13 = vld [vmem:[#allocation9 + $0x1a0] sm:$0xf] }
  0x9b   : > { %1752 = vmatpush.bf16.msrb.mxu2 %v2592_v15  ;;  %1087 = vmatmul.bf16.vlgmr.msra.gmra.mxu3 %v3447_v54  ;;  %v2560_v54 = vor.u32 %v2930_v49, %v2559_v33  ;;  %v2519_v15 = vld [vmem:[#allocation9 + $0xe0] sm:$0xf]  ;;  %v2962_v32 = vld [vmem:[#allocation9 + $0x234] sm:$0xf0]  ;;  %v2639_v33 = vld [vmem:[#allocation9 + $0x1d0] sm:$0xf]  ;;  %v2420_v8 = vor.u32 %v2893_v5, %v2417_v6  ;;  %p3212_p9 = pnand %p3211_p7, %p3207_p5 }
  0x9c   : > { %v2520_v30 = vor.u32 %v2920_v16, %v2519_v15  ;;  %1765 = vmatpush.bf16.msrb.mxu3 %v2656_v14  ;;  %v2950_v49 = vld [vmem:[#allocation9 + $0x1d4] sm:$0xf0]  ;;  %v2944_v14 = vld [vmem:[#allocation9 + $0x1a4] sm:$0xf0]  ;;  %v2479_v16 = vld [vmem:[#allocation9 + $0x90] sm:$0xf] }
  0x9d   : > { %1727 = vmatpush.bf16.msrb.mxu0 %v2456_v19  ;;  %v2452_v19 = vor.u32 %v2901_v17, %v2449_v18  ;;  %v2616_v15 = vor.u32 %v2944_v14, %v2615_v13  ;;  %v2915_v6 = vld [vmem:[#allocation9 + $0xc4] sm:$0xf]  ;;  %v2937_v14 = vld [vmem:[#allocation9 + $0x174] sm:$0xf] }
  0x9e   : > { %1740 = vmatpush.bf16.msrb.mxu1 %v2520_v30  ;;  %v2910_v30 = vld [vmem:[#allocation9 + $0x94] sm:$0xf0] }
  0x9f   : > { %1753 = vmatpush.bf16.msrb.mxu2 %v2584_v20  ;;  %v2695_v20 = vld [vmem:[#allocation9 + $0x240] sm:$0xf]  ;;  %v2480_v18 = vor.u32 %v2910_v30, %v2479_v16  ;;  %v2497_v16 = vld [vmem:[#allocation9 + $0xb8] sm:$0xf0] }
  0xa0   : > { %v2696_v22 = vor.u32 %v2964_v21, %v2695_v20  ;;  %v2409_v20 = vld [vmem:[#allocation9 + $0x8] sm:$0xf0]  ;;  %v2593_v30 = vld [vmem:[#allocation9 + $0x178] sm:$0xf0] }
  0xa1   : > { %1728 = vmatpush.bf16.msrb.mxu0 %v2448_v25  ;;  %v2648_v25 = vor.u32 %v2952_v24, %v2647_v23 }
  0xa3   : > { %1754 = vmatpush.bf16.msrb.mxu2 %v2576_v26  ;;  %v2511_v26 = vld [vmem:[#allocation9 + $0xd0] sm:$0xf]  ;;  %1766 = vmatpush.bf16.msrb.mxu3 %v2648_v25 }
  0xa4   : > { %v2512_v28 = vor.u32 %v2918_v27, %v2511_v26  ;;  %v2607_v25 = vld [vmem:[#allocation9 + $0x190] sm:$0xf]  ;;  %v2942_v26 = vld [vmem:[#allocation9 + $0x194] sm:$0xf0] }
  0xa5   : > { %1729 = vmatpush.bf16.msrb.mxu0 %v2440_v29  ;;  %v2444_v29 = vor.u32 %v2899_v39, %v2441_v50  ;;  %v2608_v27 = vor.u32 %v2942_v26, %v2607_v25  ;;  %v2908_v39 = vld [vmem:[#allocation9 + $0x84] sm:$0xf0]  ;;  %v2596_v25 = vor.u32 %v2937_v14, %v2593_v30  ;;  %v2929_v14 = vld [vmem:[#allocation9 + $0x134] sm:$0xf] }
  0xa6   : > { %1741 = vmatpush.bf16.msrb.mxu1 %v2512_v28  ;;  %v2471_v28 = vld [vmem:[#allocation9 + $0x80] sm:$0xf] }
  0xa7   : > { %1755 = vmatpush.bf16.msrb.mxu2 %v2568_v31  ;;  %v2687_v31 = vld [vmem:[#allocation9 + $0x230] sm:$0xf] }
  0xa8   : > { %v2688_v58 = vor.u32 %v2962_v32, %v2687_v31  ;;  %v2472_v31 = vor.u32 %v2908_v39, %v2471_v28  ;;  %v2783_v32 = vld [vmem:[#allocation9 + $0x2f0] sm:$0xf] }
  0xa9   : > { %1730 = vmatpush.bf16.msrb.mxu0 %v2432_v34  ;;  %v3457_v34 = vld [vmem:[#allocation8] sm:$0x3] }
  0xaa   : > { %v452_v44 = vperm.slane %v3457_v34, 0 }
  0xab   : > { %1756 = vmatpush.bf16.msrb.mxu2 %v2560_v54  ;;  %v2640_v54 = vor.u32 %v2950_v49, %v2639_v33  ;;  %v2599_v49 = vld [vmem:[#allocation9 + $0x180] sm:$0xf] }
  0xad   : > { %1731 = vmatpush.bf16.msrb.mxu0 %v2424_v37  ;;  %v2504_v37 = vor.u32 %v2916_v36, %v2503_v35  ;;  %1767 = vmatpush.bf16.msrb.mxu3 %v2640_v54  ;;  %v2940_v54 = vld [vmem:[#allocation9 + $0x184] sm:$0xf0]  ;;  %v2921_v36 = vld [vmem:[#allocation9 + $0xf4] sm:$0xf] }
  0xae   : > { %v2600_v35 = vor.u32 %v2940_v54, %v2599_v49  ;;  %v2967_v54 = vld [vmem:[#allocation9 + $0x264] sm:$0xf] }
  0xaf   : > { %1757 = vmatpush.bf16.msrb.mxu2 %v2552_v41  ;;  %v2436_v41 = vor.u32 %v2897_v38, %v2433_v40  ;;  %1742 = vmatpush.bf16.msrb.mxu1 %v2504_v37  ;;  %v2529_v37 = vld [vmem:[#allocation9 + $0xf8] sm:$0xf0] }
  0xb0   : > { %v2532_v40 = vor.u32 %v2921_v36, %v2529_v37  ;;  %v2735_v37 = vld [vmem:[#allocation9 + $0x290] sm:$0xf] }
  0xb1   : > { %1732 = vmatpush.bf16.msrb.mxu0 %v2416_v45  ;;  %v2680_v45 = vor.u32 %v2960_v43, %v2679_v42  ;;  %1768 = vmatpush.bf16.msrb.mxu3 %v2632_v48  ;;  %v2984_v42 = vld [vmem:[#allocation9 + $0x2e4] sm:$0xf0]  ;;  %v2767_v48 = vld [vmem:[#allocation9 + $0x2d0] sm:$0xf] }
  0xb3   : > { %1758 = vmatpush.bf16.msrb.mxu2 %v2544_v51  ;;  %v2495_v51 = vld [vmem:[#allocation9 + $0xb0] sm:$0xf] }
  0xb5   : > { %1733 = vmatpush.bf16.msrb.mxu0 %v2408_v55  ;;  %v2496_v55 = vor.u32 %v2914_v52, %v2495_v51 }
  0xb7   : > { %1759 = vmatpush.bf16.msrb.mxu2 %v2536_v60  ;;  %1743 = vmatpush.bf16.msrb.mxu1 %v2496_v55  ;;  %v2524_v55 = vor.u32 %v2919_v46, %v2521_v47  ;;  %v2577_v47 = vld [vmem:[#allocation9 + $0x158] sm:$0xf0] }
  0xb9   : > { %1778 = vmatpush.bf16.msra.mxu0 %v2720_v56  ;;  %v2425_v56 = vld [vmem:[#allocation9 + $0x28] sm:$0xf0] }
  0xba   : > { %v2428_v61 = vor.u32 %v2895_v53, %v2425_v56  ;;  %v2982_v56 = vld [vmem:[#allocation9 + $0x2d4] sm:$0xf0] }
  0xbb   : > { %1804 = vmatpush.bf16.msra.mxu2 %v2468_v0  ;;  %v2946_v0 = vld [vmem:[#allocation9 + $0x1b4] sm:$0xf0]  ;;  %1744 = vmatpush.bf16.msrb.mxu1 %v2488_v7  ;;  %v2768_v57 = vor.u32 %v2982_v56, %v2767_v48  ;;  %v2505_v7 = vld [vmem:[#allocation9 + $0xc8] sm:$0xf0] }
  0xbc   : > { %v2624_v3 = vor.u32 %v2946_v0, %v2623_v63  ;;  %v2759_v0 = vld [vmem:[#allocation9 + $0x2c0] sm:$0xf] }
  0xbd   : > { %1779 = vmatpush.bf16.msra.mxu0 %v2712_v2 }
  0xbe   : > { %1769 = vmatpush.bf16.msrb.mxu3 %v2624_v3 }
  0xbf   : > { %1805 = vmatpush.bf16.msra.mxu2 %v2460_v10  ;;  %v2663_v10 = vld [vmem:[#allocation9 + $0x200] sm:$0xf]  ;;  %1745 = vmatpush.bf16.msrb.mxu1 %v2480_v18 }
  0xc0   : > { %v2743_v18 = vld [vmem:[#allocation9 + $0x2a0] sm:$0xf] }
  0xc1   : > { %1780 = vmatpush.bf16.msra.mxu0 %v2704_v11  ;;  %v2956_v11 = vld [vmem:[#allocation9 + $0x204] sm:$0xf0] }
  0xc2   : > { %v2664_v12 = vor.u32 %v2956_v11, %v2663_v10  ;;  %1770 = vmatpush.bf16.msrb.mxu3 %v2616_v15  ;;  %v2751_v10 = vld [vmem:[#allocation9 + $0x2b0] sm:$0xf]  ;;  %v2978_v11 = vld [vmem:[#allocation9 + $0x2b4] sm:$0xf0]  ;;  %v2913_v15 = vld [vmem:[#allocation9 + $0xb4] sm:$0xf] }
  0xc3   : > { %1806 = vmatpush.bf16.msra.mxu2 %v2452_v19  ;;  %v2891_v19 = vld [vmem:[#allocation9 + $0x4] sm:$0xf]  ;;  %1746 = vmatpush.bf16.msrb.mxu1 %v2472_v31  ;;  %v453_v31 = vperm.slane %v3457_v34, 1  ;;  %v2481_v34 = vld [vmem:[#allocation9 + $0x98] sm:$0xf0] }
  0xc4   : > { %v2412_v23 = vor.u32 %v2891_v19, %v2409_v20  ;;  %v2976_v19 = vld [vmem:[#allocation9 + $0x2a4] sm:$0xf0] }
  0xc5   : > { %1781 = vmatpush.bf16.msra.mxu0 %v2696_v22  ;;  %v2744_v20 = vor.u32 %v2976_v19, %v2743_v18  ;;  %v2961_v19 = vld [vmem:[#allocation9 + $0x234] sm:$0xf] }
  0xc6   : > { %1771 = vmatpush.bf16.msrb.mxu3 %v2608_v27  ;;  %v2935_v27 = vld [vmem:[#allocation9 + $0x164] sm:$0xf] }
  0xc7   : > { %1807 = vmatpush.bf16.msra.mxu2 %v2444_v29 }
  0xc9   : > { %1782 = vmatpush.bf16.msra.mxu0 %v2688_v58  ;;  %v2986_v58 = vld [vmem:[#allocation9 + $0x2f4] sm:$0xf0] }
  0xca   : > { %v2784_v33 = vor.u32 %v2986_v58, %v2783_v32  ;;  %1772 = vmatpush.bf16.msrb.mxu3 %v2600_v35  ;;  %v2911_v58 = vld [vmem:[#allocation9 + $0xa4] sm:$0xf]  ;;  %v2713_v35 = vld [vmem:[#allocation9 + $0x268] sm:$0xf0] }
  0xcb   : > { %1808 = vmatpush.bf16.msra.mxu2 %v2436_v41  ;;  %v2775_v41 = vld [vmem:[#allocation9 + $0x2e0] sm:$0xf] }
  0xcc   : > { %1791 = vmatpush.bf16.msra.mxu1 %v2784_v33  ;;  %v2489_v33 = vld [vmem:[#allocation9 + $0xa8] sm:$0xf0] }
  0xcd   : > { %1783 = vmatpush.bf16.msra.mxu0 %v2680_v45  ;;  %v2492_v36 = vor.u32 %v2911_v58, %v2489_v33  ;;  %v2545_v58 = vld [vmem:[#allocation9 + $0x118] sm:$0xf0] }
  0xce   : > { %1817 = vmatpush.bf16.msra.mxu3 %v2532_v40 }
  0xcf   : > { %1809 = vmatpush.bf16.msra.mxu2 %v2428_v61  ;;  %v2513_v61 = vld [vmem:[#allocation9 + $0xd8] sm:$0xf0] }
  0xd1   : > { %1784 = vmatpush.bf16.msra.mxu0 %v2672_v62 }
  0xd2   : > { %1818 = vmatpush.bf16.msra.mxu3 %v2524_v55 }
  0xd3   : > { %1810 = vmatpush.bf16.msra.mxu2 %v2420_v8 }
  0xd5   : > { %1785 = vmatpush.bf16.msra.mxu0 %v2664_v12  ;;  %v2752_v12 = vor.u32 %v2978_v11, %v2751_v10 }
  0xd7   : > { %1811 = vmatpush.bf16.msra.mxu2 %v2412_v23  ;;  %v2721_v23 = vld [vmem:[#allocation9 + $0x278] sm:$0xf0] }
  0xdc   : > { %v945_v60 = vpop.f32.mrf.mxu0 }
  0xdd   : > { %v946_v9 = vadd.f32 %v945_v60, %v452_v44  ;;  %v2776_v44 = vor.u32 %v2984_v42, %v2775_v41  ;;  %v2917_v60 = vld [vmem:[#allocation9 + $0xd4] sm:$0xf] }
  0xde   : > { %v958_v2 = vpop.f32.mrf.mxu1  ;;  %v2516_v63 = vor.u32 %v2917_v60, %v2513_v61  ;;  %v2965_v60 = vld [vmem:[#allocation9 + $0x254] sm:$0xf]  ;;  %v2907_v61 = vld [vmem:[#allocation9 + $0x84] sm:$0xf] }
  0xdf   : > { %v959_v17 = vadd.f32 %v958_v2, %v946_v9  ;;  %1792 = vmatpush.bf16.msra.mxu1 %v2776_v44  ;;  %v2760_v2 = vor.u32 %v2980_v1, %v2759_v0  ;;  %v2508_v9 = vor.u32 %v2915_v6, %v2505_v7  ;;  %v2705_v0 = vld [vmem:[#allocation9 + $0x258] sm:$0xf0]  ;;  %v2931_v1 = vld [vmem:[#allocation9 + $0x144] sm:$0xf] }
  0xe0   : > { %1819 = vmatpush.bf16.msra.mxu3 %v2516_v63  ;;  %v2708_v7 = vor.u32 %v2965_v60, %v2705_v0  ;;  %v2951_v60 = vld [vmem:[#allocation9 + $0x1e4] sm:$0xf]  ;;  %v2649_v0 = vld [vmem:[#allocation9 + $0x1e8] sm:$0xf0] }
  0xe3   : > { %1793 = vmatpush.bf16.msra.mxu1 %v2768_v57  ;;  %v2716_v57 = vor.u32 %v2967_v54, %v2713_v35 }
  0xe4   : > { %v947_v21 = vpop.f32.mrf.mxu0  ;;  %1820 = vmatpush.bf16.msra.mxu3 %v2508_v9  ;;  %v2963_v9 = vld [vmem:[#allocation9 + $0x244] sm:$0xf] }
  0xe6   : > { %v960_v24 = vpop.f32.mrf.mxu1 }
  0xe7   : > { %v971_v22 = vpop.f32.mrf.mxu2  ;;  %1794 = vmatpush.bf16.msra.mxu1 %v2760_v2  ;;  %v2569_v2 = vld [vmem:[#allocation9 + $0x148] sm:$0xf0] }
  0xe8   : > { %v972_v50 = vadd.f32 %v971_v22, %v959_v17  ;;  %v984_v29 = vpop.f32.mrf.mxu3  ;;  %v2500_v17 = vor.u32 %v2913_v15, %v2497_v16  ;;  %v2969_v22 = vld [vmem:[#allocation9 + $0x274] sm:$0xf]  ;;  %v2561_v15 = vld [vmem:[#allocation9 + $0x138] sm:$0xf0] }
  0xe9   : > { %v2724_v41 = vor.u32 %v2969_v22, %v2721_v23  ;;  %v2564_v18 = vor.u32 %v2929_v14, %v2561_v15  ;;  %v2927_v22 = vld [vmem:[#allocation9 + $0x124] sm:$0xf]  ;;  %v2553_v23 = vld [vmem:[#allocation9 + $0x128] sm:$0xf0]  ;;  %v2981_v15 = vld [vmem:[#allocation9 + $0x2d4] sm:$0xf] }
  0xea   : > { %v985_v38 = vadd.f32 %v984_v29, %v972_v50  ;;  %1821 = vmatpush.bf16.msra.mxu3 %v2500_v17  ;;  %v2585_v29 = vld [vmem:[#allocation9 + $0x168] sm:$0xf0] }
  0xeb   : > { %1795 = vmatpush.bf16.msra.mxu1 %v2752_v12  ;;  %v2588_v42 = vor.u32 %v2935_v27, %v2585_v29  ;;  %v2697_v12 = vld [vmem:[#allocation9 + $0x248] sm:$0xf0]  ;;  %v2959_v27 = vld [vmem:[#allocation9 + $0x224] sm:$0xf] }
  0xec   : > { %v2700_v17 = vor.u32 %v2963_v9, %v2697_v12  ;;  %v2641_v9 = vld [vmem:[#allocation9 + $0x1d8] sm:$0xf0] }
  0xee   : > { %1822 = vmatpush.bf16.msra.mxu3 %v2492_v36  ;;  %v2957_v36 = vld [vmem:[#allocation9 + $0x214] sm:$0xf] }
  0xef   : > { %v973_v43 = vpop.f32.mrf.mxu2  ;;  %1796 = vmatpush.bf16.msra.mxu1 %v2744_v20 }
  0xf0   : > { %v986_v53 = vpop.f32.mrf.mxu3  ;;  %v2933_v43 = vld [vmem:[#allocation9 + $0x154] sm:$0xf] }
  0xf5   : > { %v997_v45 = vpop.f32.mrf.mxu0 }
  0xf6   : > { %v998_v51 = vadd.f32 %v997_v45, %v985_v38  ;;  %v1010_v52 = vpop.f32.mrf.mxu1  ;;  %v2974_v38 = vld [vmem:[#allocation9 + $0x294] sm:$0xf0]  ;;  %v2909_v45 = vld [vmem:[#allocation9 + $0x94] sm:$0xf] }
  0xf7   : > { %v2736_v44 = vor.u32 %v2974_v38, %v2735_v37  ;;  %v2484_v48 = vor.u32 %v2909_v45, %v2481_v34  ;;  %v2673_v37 = vld [vmem:[#allocation9 + $0x218] sm:$0xf0] }
  0xf8   : > { %v1011_v59 = vadd.f32 %v1010_v52, %v998_v51  ;;  %v2727_v51 = vld [vmem:[#allocation9 + $0x280] sm:$0xf]  ;;  %v2972_v52 = vld [vmem:[#allocation9 + $0x284] sm:$0xf0] }
  0xf9   : > { %1797 = vmatpush.bf16.msra.mxu1 %v2736_v44  ;;  %v2728_v53 = vor.u32 %v2972_v52, %v2727_v51  ;;  %1823 = vmatpush.bf16.msra.mxu3 %v2484_v48  ;;  %v2676_v44 = vor.u32 %v2957_v36, %v2673_v37  ;;  %v2665_v48 = vld [vmem:[#allocation9 + $0x208] sm:$0xf0]  ;;  %v2953_v51 = vld [vmem:[#allocation9 + $0x1f4] sm:$0xf]  ;;  %v2657_v52 = vld [vmem:[#allocation9 + $0x1f8] sm:$0xf0] }
  0xfa   : > { %v1092_v62 = vmax.f32 %v1011_v59, 0.0  ;;  %v2580_v59 = vor.u32 %v2933_v43, %v2577_v47  ;;  %v2955_v47 = vld [vmem:[#allocation9 + $0x204] sm:$0xf] }
  0xfc   : > { %v1096_v3 = vrot.slane %v1092_v62, 7  ;;  %v2473_v62 = vld [vmem:[#allocation9 + $0x88] sm:$0xf0] }
  0xfd   : > { %v3460_v4 = vpop.f32.mrf.mxu2  ;;  %v999_v5 = vpop.f32.mrf.mxu0  ;;  %1798 = vmatpush.bf16.msra.mxu1 %v2728_v53  ;;  %v2985_v53 = vld [vmem:[#allocation9 + $0x2f4] sm:$0xf] }
  0xfe   : > { %1100 = vst [vmem:[#allocation2] sm:$0xfe] %v1096_v3  ;;  %v1012_v8 = vpop.f32.mrf.mxu1  ;;  %v3462_v13 = vpop.f32.mrf.mxu3  ;;  %v1024_v63 = vadd.f32 %v3460_v4, %v453_v31  ;;  %v2681_v31 = vld [vmem:[#allocation9 + $0x228] sm:$0xf0] }
  0xff   : > { %1102 = vst [vmem:[#allocation2 + $0x10] sm:$0x1] %v1096_v3  ;;  %v2476_v3 = vor.u32 %v2907_v61, %v2473_v62  ;;  %v2572_v8 = vor.u32 %v2931_v1, %v2569_v2  ;;  %v2684_v54 = vor.u32 %v2959_v27, %v2681_v31  ;;  %v2977_v27 = vld [vmem:[#allocation9 + $0x2b4] sm:$0xf]  ;;  %v2617_v31 = vld [vmem:[#allocation9 + $0x1a8] sm:$0xf0] }
 0x100   : > { %v1037_v10 = vadd.f32 %v3462_v13, %v1024_v63 }
 0x101   : > { %1824 = vmatpush.bf16.msra.mxu3 %v2476_v3 }
 0x105   : > { %v1025_v21 = vpop.f32.mrf.mxu2  ;;  %v1104_v24 = vld [vmem:[#allocation2] sm:$0xff] }
 0x106   : > { %v1106_v26 = vld [vmem:[#allocation2] sm:$0xfe]  ;;  %v3464_v28 = vpack.c.bf16 %v1104_v24, %v1104_v24  ;;  %v1108_v39 = vld [vmem:[#allocation2 + $0x10] sm:$0x1]  ;;  %v1038_v49 = vpop.f32.mrf.mxu3 }
 0x107   : > { %v1118_v50 = vrot.slane %v1106_v26, 1  ;;  %v1119_v32 = vrot.slane %v1108_v39, 1  ;;  %v1110_v55 = vld [vmem:[#allocation2] sm:$0xfc]  ;;  %v1112_v56 = vld [vmem:[#allocation2 + $0x10] sm:$0x3]  ;;  %v2556_v26 = vor.u32 %v2927_v22, %v2553_v23 }
 0x108   : > { %1734 = vmatmul.bf16.vlgmr.msrb.gmra.mxu0 %v3464_v28  ;;  %v1130_v5 = vrot.slane %v1110_v55, 2  ;;  %v1131_v6 = vrot.slane %v1112_v56, 2  ;;  %v2689_v21 = vld [vmem:[#allocation9 + $0x238] sm:$0xf0]  ;;  %v2761_v22 = vld [vmem:[#allocation9 + $0x2c8] sm:$0xf0] }
 0x109   : > { %1830 = vmatpush.bf16.msrb.mxu0 %v2596_v25  ;;  %v1120_v40 = vsel %vm326_vm1, %v1118_v50, %v1119_v32  ;;  %v2692_v25 = vor.u32 %v2961_v19, %v2689_v21  ;;  %v2925_v32 = vld [vmem:[#allocation9 + $0x114] sm:$0xf]  ;;  %v2785_v55 = vld [vmem:[#allocation9 + $0x2f8] sm:$0xf0]  ;;  %v2979_v21 = vld [vmem:[#allocation9 + $0x2c4] sm:$0xf] }
 0x10a   : > { %v3469_v46 = vpack.c.bf16 %v1120_v40, %v1120_v40  ;;  %v1132_v16 = vsel %vm339_vm2, %v1130_v5, %v1131_v6  ;;  %v2548_v35 = vor.u32 %v2925_v32, %v2545_v58  ;;  %v2923_v40 = vld [vmem:[#allocation9 + $0x104] sm:$0xf]  ;;  %v2788_v3 = vor.u32 %v2985_v53, %v2785_v55  ;;  %v2945_v23 = vld [vmem:[#allocation9 + $0x1b4] sm:$0xf] }
 0x10b   : > { %v1142_v20 = vpack.c.bf16 %v1132_v16, %v1132_v16  ;;  %v2652_v5 = vor.u32 %v2951_v60, %v2649_v0  ;;  %v2947_v16 = vld [vmem:[#allocation9 + $0x1c4] sm:$0xf] }
 0x10c   : > { %1760 = vmatmul.bf16.vlgmr.msrb.gmra.mxu2 %v3469_v46 }
 0x10d   : > { %1856 = vmatpush.bf16.msrb.mxu2 %v2724_v41  ;;  %1831 = vmatpush.bf16.msrb.mxu0 %v2588_v42  ;;  %v2537_v41 = vld [vmem:[#allocation9 + $0x108] sm:$0xf0] }
 0x10e   : > { %v2540_v45 = vor.u32 %v2923_v40, %v2537_v41  ;;  %v2737_v40 = vld [vmem:[#allocation9 + $0x298] sm:$0xf0]  ;;  %v2939_v41 = vld [vmem:[#allocation9 + $0x184] sm:$0xf] }
 0x111   : > { %1857 = vmatpush.bf16.msrb.mxu2 %v2716_v57  ;;  %1832 = vmatpush.bf16.msrb.mxu0 %v2580_v59  ;;  %v2660_v57 = vor.u32 %v2953_v51, %v2657_v52 }
 0x115   : > { %v1049_v11 = vpop.f32.mrf.mxu0  ;;  %1858 = vmatpush.bf16.msrb.mxu2 %v2708_v7  ;;  %1833 = vmatpush.bf16.msrb.mxu0 %v2572_v8  ;;  %v2777_v7 = vld [vmem:[#allocation9 + $0x2e8] sm:$0xf0]  ;;  %v2949_v8 = vld [vmem:[#allocation9 + $0x1d4] sm:$0xf] }
 0x116   : > { %v1062_v4 = vpop.f32.mrf.mxu1  ;;  %v1050_v30 = vadd.f32 %v1049_v11, %v1037_v10  ;;  %v2644_v14 = vor.u32 %v2949_v8, %v2641_v9 }
 0x118   : > { %v1063_v24 = vadd.f32 %v1062_v4, %v1050_v30  ;;  %1786 = vmatmul.bf16.vlgmr.msra.gmra.mxu0 %v1142_v20  ;;  %v2769_v4 = vld [vmem:[#allocation9 + $0x2d8] sm:$0xf0]  ;;  %v2633_v30 = vld [vmem:[#allocation9 + $0x1c8] sm:$0xf0] }
 0x119   : > { %1859 = vmatpush.bf16.msrb.mxu2 %v2700_v17  ;;  %1834 = vmatpush.bf16.msrb.mxu0 %v2564_v18  ;;  %v2772_v19 = vor.u32 %v2981_v15, %v2769_v4 }
 0x11c   : > { %1812 = vmatmul.bf16.vlgmr.msra.gmra.mxu2 %v3464_v28  ;;  %v2668_v28 = vor.u32 %v2955_v47, %v2665_v48 }
 0x11d   : > { %v1075_v13 = vpop.f32.mrf.mxu2  ;;  %v1051_v29 = vpop.f32.mrf.mxu0  ;;  %1860 = vmatpush.bf16.msrb.mxu2 %v2692_v25  ;;  %1835 = vmatpush.bf16.msrb.mxu0 %v2556_v26  ;;  %v2764_v25 = vor.u32 %v2979_v21, %v2761_v22 }
 0x11e   : > { %v1076_v39 = vadd.f32 %v1075_v13, %v1063_v24  ;;  %v1088_v50 = vpop.f32.mrf.mxu3  ;;  %v1064_v33 = vpop.f32.mrf.mxu1  ;;  %v2625_v24 = vld [vmem:[#allocation9 + $0x1b8] sm:$0xf0]  ;;  %v2943_v29 = vld [vmem:[#allocation9 + $0x1a4] sm:$0xf] }
 0x11f   : > { %v2628_v26 = vor.u32 %v2945_v23, %v2625_v24  ;;  %v2620_v58 = vor.u32 %v2943_v29, %v2617_v31  ;;  %v2975_v33 = vld [vmem:[#allocation9 + $0x2a4] sm:$0xf] }
 0x120   : > { %v1089_v49 = vadd.f32 %v1088_v50, %v1076_v39  ;;  %v2753_v50 = vld [vmem:[#allocation9 + $0x2b8] sm:$0xf0] }
 0x121   : > { %1861 = vmatpush.bf16.msrb.mxu2 %v2684_v54  ;;  %1836 = vmatpush.bf16.msrb.mxu0 %v2548_v35  ;;  %v2756_v32 = vor.u32 %v2977_v27, %v2753_v50  ;;  %v2941_v54 = vld [vmem:[#allocation9 + $0x194] sm:$0xf]  ;;  %v2609_v35 = vld [vmem:[#allocation9 + $0x198] sm:$0xf0] }
 0x122   : > { %v1093_v38 = vmax.f32 %v1089_v49, 0.0  ;;  %v2745_v49 = vld [vmem:[#allocation9 + $0x2a8] sm:$0xf0]  ;;  %v2612_v37 = vor.u32 %v2941_v54, %v2609_v35 }
 0x123   : > { %v2748_v36 = vor.u32 %v2975_v33, %v2745_v49 }
 0x124   : > { %v1097_v42 = vrot.slane %v1093_v38, 7  ;;  %v2973_v38 = vld [vmem:[#allocation9 + $0x294] sm:$0xf] }
 0x125   : > { %v1077_v43 = vpop.f32.mrf.mxu2  ;;  %1862 = vmatpush.bf16.msrb.mxu2 %v2676_v44  ;;  %1837 = vmatpush.bf16.msrb.mxu0 %v2540_v45  ;;  %v2971_v45 = vld [vmem:[#allocation9 + $0x284] sm:$0xf] }
 0x126   : > { %1101 = vst [vmem:[#allocation2 + $0x8] sm:$0xfe] %v1097_v42  ;;  %v1090_v34 = vpop.f32.mrf.mxu3  ;;  %v2740_v43 = vor.u32 %v2973_v38, %v2737_v40 }
 0x127   : > { %1103 = vst [vmem:[#allocation2 + $0x18] sm:$0x1] %v1097_v42  ;;  %v2601_v42 = vld [vmem:[#allocation9 + $0x188] sm:$0xf0] }
 0x128   : > { %1838 = vmatmul.bf16.vlgmr.msrb.gmra.mxu0 %v3469_v46  ;;  %v2983_v46 = vld [vmem:[#allocation9 + $0x2e4] sm:$0xf]  ;;  %v2604_v44 = vor.u32 %v2939_v41, %v2601_v42  ;;  %v2729_v34 = vld [vmem:[#allocation9 + $0x288] sm:$0xf0] }
 0x129   : > { %1863 = vmatpush.bf16.msrb.mxu2 %v2668_v28  ;;  %v2780_v12 = vor.u32 %v2983_v46, %v2777_v7  ;;  %v2732_v47 = vor.u32 %v2971_v45, %v2729_v34 }
 0x12c   : > { %1864 = vmatmul.bf16.vlgmr.msrb.gmra.mxu2 %v1142_v20  ;;  %v2636_v20 = vor.u32 %v2947_v16, %v2633_v30 }
 0x12d   : > { %v1105_v56 = vld [vmem:[#allocation2 + $0x8] sm:$0xff] }
 0x12e   : > { %v1107_v59 = vld [vmem:[#allocation2 + $0x8] sm:$0xfe]  ;;  %v1139_v61 = vpack.c.bf16 %v1105_v56, %v1105_v56  ;;  %v1109_v62 = vld [vmem:[#allocation2 + $0x18] sm:$0x1] }
 0x12f   : > { %v1121_v63 = vrot.slane %v1107_v59, 1  ;;  %v1122_v1 = vrot.slane %v1109_v62, 1  ;;  %v1111_v10 = vld [vmem:[#allocation2 + $0x8] sm:$0xfc]  ;;  %v1113_v11 = vld [vmem:[#allocation2 + $0x18] sm:$0x3] }
 0x130   : > { %1747 = vmatmul.bf16.vlgmr.msrb.gmra.mxu1 %v1139_v61  ;;  %v1133_v17 = vrot.slane %v1111_v10, 2  ;;  %v1134_v18 = vrot.slane %v1113_v11, 2  ;;  %v1882_v10 = vld [vmem:[%s3413_s17] sm:$0xff] }
 0x131   : > { %1843 = vmatpush.bf16.msrb.mxu1 %v2660_v57  ;;  %v1123_v2 = vsel %vm326_vm1, %v1121_v63, %v1122_v1  ;;  %v1240_v57 = vld [vmem:[%s3523_s4] sm:$0x3] }
 0x132   : > { %v1141_v6 = vpack.c.bf16 %v1123_v2, %v1123_v2  ;;  %v1135_v13 = vsel %vm339_vm2, %v1133_v17, %v1134_v18  ;;  %v1243_v16 = vperm.slane %v1240_v57, 1 }
 0x133   : > { %v1143_v39 = vpack.c.bf16 %v1135_v13, %v1135_v13 }
 0x134   : > { %1773 = vmatmul.bf16.vlgmr.msrb.gmra.mxu3 %v1141_v6 }
 0x135   : > { %1869 = vmatpush.bf16.msrb.mxu3 %v2788_v3  ;;  %1844 = vmatpush.bf16.msrb.mxu1 %v2652_v5 }
 0x139   : > { %1870 = vmatpush.bf16.msrb.mxu3 %v2780_v12  ;;  %1845 = vmatpush.bf16.msrb.mxu1 %v2644_v14 }
 0x13d   : > { %1871 = vmatpush.bf16.msrb.mxu3 %v2772_v19  ;;  %1846 = vmatpush.bf16.msrb.mxu1 %v2636_v20 }
 0x140   : > { %1799 = vmatmul.bf16.vlgmr.msra.gmra.mxu1 %v1143_v39 }
 0x141   : > { %1872 = vmatpush.bf16.msrb.mxu3 %v2764_v25  ;;  %1847 = vmatpush.bf16.msrb.mxu1 %v2628_v26  ;;  %v1883_v25 = vld [vmem:[%s3413_s17 + $0x8] sm:$0xff] }
 0x144   : > { %1825 = vmatmul.bf16.vlgmr.msra.gmra.mxu3 %v1139_v61  ;;  %v1242_v61 = vperm.slane %v1240_v57, 0 }
 0x145   : > { %1873 = vmatpush.bf16.msrb.mxu3 %v2756_v32  ;;  %1848 = vmatpush.bf16.msrb.mxu1 %v2620_v58 }
 0x149   : > { %1874 = vmatpush.bf16.msrb.mxu3 %v2748_v36  ;;  %1849 = vmatpush.bf16.msrb.mxu1 %v2612_v37 }
 0x14d   : > { %1875 = vmatpush.bf16.msrb.mxu3 %v2740_v43  ;;  %1850 = vmatpush.bf16.msrb.mxu1 %v2604_v44 }
 0x150   : > { %1851 = vmatmul.bf16.vlgmr.msrb.gmra.mxu1 %v1141_v6 }
 0x151   : > { %1876 = vmatpush.bf16.msrb.mxu3 %v2732_v47 }
 0x154   : > { %1877 = vmatmul.bf16.vlgmr.msrb.gmra.mxu3 %v1143_v39 }
 0x185   : > { %v1735_v48 = vpop.f32.mrf.mxu0 }
 0x186   : > { %v1736_v63 = vadd.f32 %v1735_v48, %v1242_v61 }
 0x18d   : > { %v1737_v28 = vpop.f32.mrf.mxu0 }
 0x18f   : > { %v1761_v51 = vpop.f32.mrf.mxu2 }
 0x195   : > { %v1787_v52 = vpop.f32.mrf.mxu0 }
 0x197   : > { %v1763_v53 = vpop.f32.mrf.mxu2 }
 0x19d   : > { %v1789_v55 = vpop.f32.mrf.mxu0 }
 0x19f   : > { %v1813_v56 = vpop.f32.mrf.mxu2 }
 0x1a0   : > { %v1814_v17 = vadd.f32 %v1813_v56, %v1243_v16 }
 0x1a5   : > { %v1839_v59 = vpop.f32.mrf.mxu0 }
 0x1a7   : > { %v1815_v60 = vpop.f32.mrf.mxu2 }
 0x1ad   : > { %v1748_v62 = vpop.f32.mrf.mxu1  ;;  %v1841_v0 = vpop.f32.mrf.mxu0 }
 0x1ae   : > { %v1749_v1 = vadd.f32 %v1748_v62, %v1736_v63 }
 0x1af   : > { %v1865_v2 = vpop.f32.mrf.mxu2 }
 0x1b0   : > { %v1762_v5 = vadd.f32 %v1761_v51, %v1749_v1 }
 0x1b5   : > { %v1750_v3 = vpop.f32.mrf.mxu1 }
 0x1b7   : > { %v1774_v46 = vpop.f32.mrf.mxu3  ;;  %v1867_v7 = vpop.f32.mrf.mxu2 }
 0x1b8   : > { %v1775_v6 = vadd.f32 %v1774_v46, %v1762_v5 }
 0x1ba   : > { %v1788_v8 = vadd.f32 %v1787_v52, %v1775_v6 }
 0x1bd   : > { %v1800_v9 = vpop.f32.mrf.mxu1 }
 0x1be   : > { %v1801_v11 = vadd.f32 %v1800_v9, %v1788_v8 }
 0x1bf   : > { %v1776_v12 = vpop.f32.mrf.mxu3 }
 0x1c0   : > { %v1884_v14 = vadd.f32 %v1882_v10, %v1801_v11 }
 0x1c2   : > { %v1886_v15 = vmax.f32 %v1884_v14, 0.0 }
 0x1c4   : > { %1888 = vst [vmem:[%s290_s12] sm:$0xff] %v1886_v15 }
 0x1c5   : > { %v1802_v4 = vpop.f32.mrf.mxu1 }
 0x1c7   : > { %v1826_v30 = vpop.f32.mrf.mxu3 }
 0x1c8   : > { %v1827_v18 = vadd.f32 %v1826_v30, %v1814_v17 }
 0x1ca   : > { %v1840_v21 = vadd.f32 %v1839_v59, %v1827_v18 }
 0x1cd   : > { %v1852_v19 = vpop.f32.mrf.mxu1 }
 0x1ce   : > { %v1853_v22 = vadd.f32 %v1852_v19, %v1840_v21 }
 0x1cf   : > { %v1828_v20 = vpop.f32.mrf.mxu3 }
 0x1d0   : > { %v1866_v24 = vadd.f32 %v1865_v2, %v1853_v22 }
 0x1d5   : > { %v1854_v23 = vpop.f32.mrf.mxu1 }
 0x1d7   : > { %v1878_v13 = vpop.f32.mrf.mxu3 }
 0x1d8   : > { %v1879_v26 = vadd.f32 %v1878_v13, %v1866_v24 }
 0x1da   : > { %v1885_v27 = vadd.f32 %v1883_v25, %v1879_v26 }
 0x1dc   : > { %v1887_v39 = vmax.f32 %v1885_v27, 0.0 }
 0x1de   : > { %1889 = vst [vmem:[%s290_s12 + $0x8] sm:$0xff] %v1887_v39 }
 0x1df   : > { %v1880_v50 = vpop.f32.mrf.mxu3 }
 0x1e0   : > { %3215 = shalt.err (!%p3212_p9)
}
 0x1e1   : > { %3002 = dma.vmem_to_hbm [thread:$0]  (%p3376_p13), %s1905_s24, 256, %s1907_s8, %s1891_s7  }
 0x1e2 PF: > { %s1918_s30 = sand.u32 1, %s3250_s18   ;;  %p3531_p10 = scmp.ge.s32.totalorder %s3262_s21, 2 }
 0x1e3   : > { %s1919_s28 = scalar_lea.sflag [#allocation5], %s1918_s30 }
 0x1e4   : > { %p3019_p11 = pnand %p3531_p10, %p3381_p4 }
 0x1e6   : > { %p3020_p0 = pneg %p3019_p11 }
 0x1e8   : > { %3245 = dma.done.wait (%p3020_p0), %s1919_s28, 256  }
 0x1e9   : > { %3247 = vsyncadd (%p3020_p0), %s1919_s28, 4294967040  ;;  %p20_p2 = scmp.ge.s32.totalorder %s3356_s22, 4   ;;  %s3532_s18 = smov %s3254_s19 }
 0x1ea   : > { %s3533_s19 = smov %s3258_s20  ;;  %s3534_s20 = smov %s3368_s27 }
 0x1eb   : > { %s3535_s21 = smov %s3356_s22  ;;  %22 = sbr.rel (!%p20_p2) target bundleno = 7 (0x7), region = 98 }
 0x1f0   :  { %1925 = vsyncpa [#allocation4], 1 }
 0x1f1   :  { %1927 = vsyncpa [#allocation4 + $0x1], 1 }
 0x1f2   :  { %1928 = vsyncpa [#allocation7], 1 }
 0x1f3   :  { %1929 = vsyncpa [#allocation10], 1 }
 0x1f4   :  { %1930 = vsyncpa [#allocation5], 1 }
 0x1f5   :  { %1932 = vsyncpa [#allocation5 + $0x1], 1 }

</bundles_post_ra>
